<compile_context>
chip_gen: v5e
topology: v5e:2x2
jax: 0.10.0
libtpu: 0.0.40
codegen_flags: <defaults>
</compile_context>

<pallas_src>
import jax
import jax.numpy as jnp
from jax import lax
from jax.experimental import pallas as pl
from jax.experimental.pallas import tpu as pltpu


def classifier_forward(words_bt, emb, w_ih, w_hh, b_rnn, w_out, b_out):
    """Run the Classifier forward pass for B sequences in one Pallas call.

    words_bt : (B, seq_len) int32 (or (seq_len,) for a single sequence, in
               which case the result has shape (1, 3) like the torch module).
    Returns (B, 3) float32 logits.
    """
    squeeze_batch = False
    if words_bt.ndim == 1:
        words_bt = words_bt[None, :]
        squeeze_batch = False  # torch module also returns a leading 1 -> keep (1, 3)

    B, seq_len = words_bt.shape
    voca, in_dim = emb.shape
    hid = w_hh.shape[0]

    # Pack small parameters host-side: 7 input DMAs -> 4 descriptors.
    rnn_params = jnp.concatenate(
        [w_ih.astype(jnp.float32),
         b_rnn.reshape(1, hid).astype(jnp.float32),
         w_hh.astype(jnp.float32)], axis=0)                      # (in_dim+1+hid, hid)
    out_params = jnp.concatenate(
        [w_out.astype(jnp.float32),
         b_out.reshape(1, 3).astype(jnp.float32)], axis=0)       # (hid+1, 3)
    # Token ids flat in SMEM (1-D SMEM avoids the (8,128)-word padding of 2-D SMEM).
    words_flat = words_bt.reshape(-1).astype(jnp.int32)          # (B*seq_len,)

    def kernel(words_ref,    # SMEM (B*seq_len,) int32
               emb_ref,      # VMEM (voca, in_dim)
               rnnp_ref,     # VMEM (in_dim+1+hid, hid)
               outp_ref,     # VMEM (hid+1, 3)
               out_ref,      # VMEM (B, 3)
               xs_ref):      # VMEM scratch (seq_len*B, in_dim), time-major
        hp = lax.Precision.HIGHEST

        # --- Embedding lookup: exact dynamic row reads, time-major layout -----
        # row (t*B + b) of xs holds emb[words[b, t]]
        for t in range(seq_len):
            for b in range(B):
                idx = words_ref[b * seq_len + t]                     # SMEM scalar
                xs_ref[pl.ds(t * B + b, 1), :] = emb_ref[pl.ds(idx, 1), :]

        # --- Unpack parameters (static slices, zero-cost views) ---------------
        w_ih_k = rnnp_ref[0:in_dim, :]                               # (in_dim, hid)
        b_rnn_k = rnnp_ref[in_dim:in_dim + 1, :]                     # (1, hid)
        w_hh_k = rnnp_ref[in_dim + 1:in_dim + 1 + hid, :]            # (hid, hid)

        # --- Input projection hoisted out of the recurrence -------------------
        xw = jnp.dot(xs_ref[...], w_ih_k,
                     precision=hp,
                     preferred_element_type=jnp.float32) + b_rnn_k   # (seq_len*B, hid)

        # --- Recurrence: B sequences advance together on the sublane dim ------
        h = jnp.zeros((B, hid), jnp.float32)                         # init_rnn_hid(): zeros
        for t in range(seq_len):
            h = jnp.tanh(xw[t * B:(t + 1) * B, :]
                         + jnp.dot(h, w_hh_k,
                                   precision=hp,
                                   preferred_element_type=jnp.float32))

        # --- rnn_outs[-1] -> Linear, exactly once ------------------------------
        out_ref[...] = (jnp.dot(h, outp_ref[0:hid, :],
                                precision=hp,
                                preferred_element_type=jnp.float32)
                        + outp_ref[hid:hid + 1, :])

    out = pl.pallas_call(
        kernel,
        out_shape=jax.ShapeDtypeStruct((B, 3), jnp.float32),
        in_specs=[
            pl.BlockSpec(memory_space=pltpu.MemorySpace.SMEM),   # words (scalar reads)
            pl.BlockSpec(memory_space=pltpu.MemorySpace.VMEM),   # embedding table
            pl.BlockSpec(memory_space=pltpu.MemorySpace.VMEM),   # packed RNN params
            pl.BlockSpec(memory_space=pltpu.MemorySpace.VMEM),   # packed output params
        ],
        out_specs=pl.BlockSpec(memory_space=pltpu.MemorySpace.VMEM),
        scratch_shapes=[pltpu.VMEM((seq_len * B, in_dim), jnp.float32)],
    )(words_flat, emb.astype(jnp.float32), rnn_params, out_params)

    return out[0:1] if squeeze_batch else out


def classifier_reference(words_bt, emb, w_ih, w_hh, b_rnn, w_out, b_out):
    """Pure-JAX reference (vmapped over the batch of sequences)."""
    hid = w_hh.shape[0]

    def single(words):
        xs = emb[words]                                          # (seq_len, in_dim)

        def step(h, x):
            h_new = jnp.tanh(
                jnp.dot(x[None, :], w_ih, precision=lax.Precision.HIGHEST)
                + jnp.dot(h, w_hh, precision=lax.Precision.HIGHEST)
                + b_rnn)
            return h_new, None

        h0 = jnp.zeros((1, hid), jnp.float32)
        h_last, _ = lax.scan(step, h0, xs)
        return (jnp.dot(h_last, w_out, precision=lax.Precision.HIGHEST) + b_out)[0]

    return jax.vmap(single)(words_bt)                            # (B, 3)


if __name__ == "__main__":
    # Small, module-consistent sizes.
    voca_size, rnn_in_dim, rnn_hid_dim = 64, 32, 32
    batch, seq_len = 8, 8

    key = jax.random.PRNGKey(0)
    k_emb, k_ih, k_hh, k_bih, k_bhh, k_wo, k_bo, k_words = jax.random.split(key, 8)

    # Deterministic, PyTorch-style initializations.
    emb = jax.random.normal(k_emb, (voca_size, rnn_in_dim), jnp.float32)   # Embedding ~ N(0,1)
    bound = 1.0 / (rnn_hid_dim ** 0.5)
    w_ih = jax.random.uniform(k_ih, (rnn_in_dim, rnn_hid_dim), jnp.float32, -bound, bound)
    w_hh = jax.random.uniform(k_hh, (rnn_hid_dim, rnn_hid_dim), jnp.float32, -bound, bound)
    b_ih = jax.random.uniform(k_bih, (rnn_hid_dim,), jnp.float32, -bound, bound)
    b_hh = jax.random.uniform(k_bhh, (rnn_hid_dim,), jnp.float32, -bound, bound)
    b_rnn = (b_ih + b_hh).reshape(1, rnn_hid_dim)
    w_out = jax.random.uniform(k_wo, (rnn_hid_dim, 3), jnp.float32, -bound, bound)
    b_out = jax.random.uniform(k_bo, (3,), jnp.float32, -bound, bound).reshape(1, 3)

    words = jax.random.randint(k_words, (batch, seq_len), 0, voca_size, dtype=jnp.int32)

    # Batched kernel call: B sequences in one pallas_call.
    logits = classifier_forward(words, emb, w_ih, w_hh, b_rnn, w_out, b_out)
    logits = jax.block_until_ready(logits)
    ref = classifier_reference(words, emb, w_ih, w_hh, b_rnn, w_out, b_out)
    assert logits.shape == (batch, 3)
    assert jnp.allclose(logits, ref, rtol=1e-3, atol=1e-3), (logits, ref)

    # Single-sequence path matches the original torch module: (seq_len,) -> (1, 3).
    single = classifier_forward(words[0], emb, w_ih, w_hh, b_rnn, w_out, b_out)
    single = jax.block_until_ready(single)
    assert single.shape == (1, 3)
    assert jnp.allclose(single, ref[0:1], rtol=1e-3, atol=1e-3), (single, ref[0:1])

    print("KERNEL_OK")
</pallas_src>

<mosaic_0001>
module attributes {stable_mosaic.version = 11 : i64} {
  func.func @kernel(%arg0: memref<64xi32, #tpu.memory_space<smem>>, %arg1: memref<64x32xf32, #tpu.memory_space<vmem>>, %arg2: memref<65x32xf32, #tpu.memory_space<vmem>>, %arg3: memref<33x3xf32, #tpu.memory_space<vmem>>, %arg4: memref<8x3xf32, #tpu.memory_space<vmem>>, %arg5: memref<64x32xf32, #tpu.memory_space<vmem>>) attributes {dimension_semantics = [], scalar_prefetch = 0 : i64, scratch_operands = 1 : i64, tpu.core_type = #tpu.core_type<tc>} {
    %c0 = arith.constant 0 : index
    %0 = memref.load %arg0[%c0] : memref<64xi32, #tpu.memory_space<smem>>
    %1 = arith.index_cast %0 : i32 to index
    %c0_0 = arith.constant 0 : index
    %2 = vector.load %arg1[%1, %c0_0] : memref<64x32xf32, #tpu.memory_space<vmem>>, vector<1x32xf32>
    %c0_1 = arith.constant 0 : index
    %c0_2 = arith.constant 0 : index
    %3 = vector.load %arg5[%c0_1, %c0_2] : memref<64x32xf32, #tpu.memory_space<vmem>>, vector<1x32xf32>
    tpu.vector_store %arg5[%c0_1, %c0_2], %2 {strides = array<i32>} : memref<64x32xf32, #tpu.memory_space<vmem>>, vector<1x32xf32>,
    %c8 = arith.constant 8 : index
    %4 = memref.load %arg0[%c8] : memref<64xi32, #tpu.memory_space<smem>>
    %5 = arith.index_cast %4 : i32 to index
    %c0_3 = arith.constant 0 : index
    %6 = vector.load %arg1[%5, %c0_3] : memref<64x32xf32, #tpu.memory_space<vmem>>, vector<1x32xf32>
    %c1 = arith.constant 1 : index
    %c0_4 = arith.constant 0 : index
    %7 = vector.load %arg5[%c1, %c0_4] : memref<64x32xf32, #tpu.memory_space<vmem>>, vector<1x32xf32>
    tpu.vector_store %arg5[%c1, %c0_4], %6 {strides = array<i32>} : memref<64x32xf32, #tpu.memory_space<vmem>>, vector<1x32xf32>,
    %c16 = arith.constant 16 : index
    %8 = memref.load %arg0[%c16] : memref<64xi32, #tpu.memory_space<smem>>
    %9 = arith.index_cast %8 : i32 to index
    %c0_5 = arith.constant 0 : index
    %10 = vector.load %arg1[%9, %c0_5] : memref<64x32xf32, #tpu.memory_space<vmem>>, vector<1x32xf32>
    %c2 = arith.constant 2 : index
    %c0_6 = arith.constant 0 : index
    %11 = vector.load %arg5[%c2, %c0_6] : memref<64x32xf32, #tpu.memory_space<vmem>>, vector<1x32xf32>
    tpu.vector_store %arg5[%c2, %c0_6], %10 {strides = array<i32>} : memref<64x32xf32, #tpu.memory_space<vmem>>, vector<1x32xf32>,
    %c24 = arith.constant 24 : index
    %12 = memref.load %arg0[%c24] : memref<64xi32, #tpu.memory_space<smem>>
    %13 = arith.index_cast %12 : i32 to index
    %c0_7 = arith.constant 0 : index
    %14 = vector.load %arg1[%13, %c0_7] : memref<64x32xf32, #tpu.memory_space<vmem>>, vector<1x32xf32>
    %c3 = arith.constant 3 : index
    %c0_8 = arith.constant 0 : index
    %15 = vector.load %arg5[%c3, %c0_8] : memref<64x32xf32, #tpu.memory_space<vmem>>, vector<1x32xf32>
    tpu.vector_store %arg5[%c3, %c0_8], %14 {strides = array<i32>} : memref<64x32xf32, #tpu.memory_space<vmem>>, vector<1x32xf32>,
    %c32 = arith.constant 32 : index
    %16 = memref.load %arg0[%c32] : memref<64xi32, #tpu.memory_space<smem>>
    %17 = arith.index_cast %16 : i32 to index
    %c0_9 = arith.constant 0 : index
    %18 = vector.load %arg1[%17, %c0_9] : memref<64x32xf32, #tpu.memory_space<vmem>>, vector<1x32xf32>
    %c4 = arith.constant 4 : index
    %c0_10 = arith.constant 0 : index
    %19 = vector.load %arg5[%c4, %c0_10] : memref<64x32xf32, #tpu.memory_space<vmem>>, vector<1x32xf32>
    tpu.vector_store %arg5[%c4, %c0_10], %18 {strides = array<i32>} : memref<64x32xf32, #tpu.memory_space<vmem>>, vector<1x32xf32>,
    %c40 = arith.constant 40 : index
    %20 = memref.load %arg0[%c40] : memref<64xi32, #tpu.memory_space<smem>>
    %21 = arith.index_cast %20 : i32 to index
    %c0_11 = arith.constant 0 : index
    %22 = vector.load %arg1[%21, %c0_11] : memref<64x32xf32, #tpu.memory_space<vmem>>, vector<1x32xf32>
    %c5 = arith.constant 5 : index
    %c0_12 = arith.constant 0 : index
    %23 = vector.load %arg5[%c5, %c0_12] : memref<64x32xf32, #tpu.memory_space<vmem>>, vector<1x32xf32>
    tpu.vector_store %arg5[%c5, %c0_12], %22 {strides = array<i32>} : memref<64x32xf32, #tpu.memory_space<vmem>>, vector<1x32xf32>,
    %c48 = arith.constant 48 : index
    %24 = memref.load %arg0[%c48] : memref<64xi32, #tpu.memory_space<smem>>
    %25 = arith.index_cast %24 : i32 to index
    %c0_13 = arith.constant 0 : index
    %26 = vector.load %arg1[%25, %c0_13] : memref<64x32xf32, #tpu.memory_space<vmem>>, vector<1x32xf32>
    %c6 = arith.constant 6 : index
    %c0_14 = arith.constant 0 : index
    %27 = vector.load %arg5[%c6, %c0_14] : memref<64x32xf32, #tpu.memory_space<vmem>>, vector<1x32xf32>
    tpu.vector_store %arg5[%c6, %c0_14], %26 {strides = array<i32>} : memref<64x32xf32, #tpu.memory_space<vmem>>, vector<1x32xf32>,
    %c56 = arith.constant 56 : index
    %28 = memref.load %arg0[%c56] : memref<64xi32, #tpu.memory_space<smem>>
    %29 = arith.index_cast %28 : i32 to index
    %c0_15 = arith.constant 0 : index
    %30 = vector.load %arg1[%29, %c0_15] : memref<64x32xf32, #tpu.memory_space<vmem>>, vector<1x32xf32>
    %c7 = arith.constant 7 : index
    %c0_16 = arith.constant 0 : index
    %31 = vector.load %arg5[%c7, %c0_16] : memref<64x32xf32, #tpu.memory_space<vmem>>, vector<1x32xf32>
    tpu.vector_store %arg5[%c7, %c0_16], %30 {strides = array<i32>} : memref<64x32xf32, #tpu.memory_space<vmem>>, vector<1x32xf32>,
    %c1_17 = arith.constant 1 : index
    %32 = memref.load %arg0[%c1_17] : memref<64xi32, #tpu.memory_space<smem>>
    %33 = arith.index_cast %32 : i32 to index
    %c0_18 = arith.constant 0 : index
    %34 = vector.load %arg1[%33, %c0_18] : memref<64x32xf32, #tpu.memory_space<vmem>>, vector<1x32xf32>
    %c8_19 = arith.constant 8 : index
    %c0_20 = arith.constant 0 : index
    %35 = vector.load %arg5[%c8_19, %c0_20] : memref<64x32xf32, #tpu.memory_space<vmem>>, vector<1x32xf32>
    tpu.vector_store %arg5[%c8_19, %c0_20], %34 {strides = array<i32>} : memref<64x32xf32, #tpu.memory_space<vmem>>, vector<1x32xf32>,
    %c9 = arith.constant 9 : index
    %36 = memref.load %arg0[%c9] : memref<64xi32, #tpu.memory_space<smem>>
    %37 = arith.index_cast %36 : i32 to index
    %c0_21 = arith.constant 0 : index
    %38 = vector.load %arg1[%37, %c0_21] : memref<64x32xf32, #tpu.memory_space<vmem>>, vector<1x32xf32>
    %c9_22 = arith.constant 9 : index
    %c0_23 = arith.constant 0 : index
    %39 = vector.load %arg5[%c9_22, %c0_23] : memref<64x32xf32, #tpu.memory_space<vmem>>, vector<1x32xf32>
    tpu.vector_store %arg5[%c9_22, %c0_23], %38 {strides = array<i32>} : memref<64x32xf32, #tpu.memory_space<vmem>>, vector<1x32xf32>,
    %c17 = arith.constant 17 : index
    %40 = memref.load %arg0[%c17] : memref<64xi32, #tpu.memory_space<smem>>
    %41 = arith.index_cast %40 : i32 to index
    %c0_24 = arith.constant 0 : index
    %42 = vector.load %arg1[%41, %c0_24] : memref<64x32xf32, #tpu.memory_space<vmem>>, vector<1x32xf32>
    %c10 = arith.constant 10 : index
    %c0_25 = arith.constant 0 : index
    %43 = vector.load %arg5[%c10, %c0_25] : memref<64x32xf32, #tpu.memory_space<vmem>>, vector<1x32xf32>
    tpu.vector_store %arg5[%c10, %c0_25], %42 {strides = array<i32>} : memref<64x32xf32, #tpu.memory_space<vmem>>, vector<1x32xf32>,
    %c25 = arith.constant 25 : index
    %44 = memref.load %arg0[%c25] : memref<64xi32, #tpu.memory_space<smem>>
    %45 = arith.index_cast %44 : i32 to index
    %c0_26 = arith.constant 0 : index
    %46 = vector.load %arg1[%45, %c0_26] : memref<64x32xf32, #tpu.memory_space<vmem>>, vector<1x32xf32>
    %c11 = arith.constant 11 : index
    %c0_27 = arith.constant 0 : index
    %47 = vector.load %arg5[%c11, %c0_27] : memref<64x32xf32, #tpu.memory_space<vmem>>, vector<1x32xf32>
    tpu.vector_store %arg5[%c11, %c0_27], %46 {strides = array<i32>} : memref<64x32xf32, #tpu.memory_space<vmem>>, vector<1x32xf32>,
    %c33 = arith.constant 33 : index
    %48 = memref.load %arg0[%c33] : memref<64xi32, #tpu.memory_space<smem>>
    %49 = arith.index_cast %48 : i32 to index
    %c0_28 = arith.constant 0 : index
    %50 = vector.load %arg1[%49, %c0_28] : memref<64x32xf32, #tpu.memory_space<vmem>>, vector<1x32xf32>
    %c12 = arith.constant 12 : index
    %c0_29 = arith.constant 0 : index
    %51 = vector.load %arg5[%c12, %c0_29] : memref<64x32xf32, #tpu.memory_space<vmem>>, vector<1x32xf32>
    tpu.vector_store %arg5[%c12, %c0_29], %50 {strides = array<i32>} : memref<64x32xf32, #tpu.memory_space<vmem>>, vector<1x32xf32>,
    %c41 = arith.constant 41 : index
    %52 = memref.load %arg0[%c41] : memref<64xi32, #tpu.memory_space<smem>>
    %53 = arith.index_cast %52 : i32 to index
    %c0_30 = arith.constant 0 : index
    %54 = vector.load %arg1[%53, %c0_30] : memref<64x32xf32, #tpu.memory_space<vmem>>, vector<1x32xf32>
    %c13 = arith.constant 13 : index
    %c0_31 = arith.constant 0 : index
    %55 = vector.load %arg5[%c13, %c0_31] : memref<64x32xf32, #tpu.memory_space<vmem>>, vector<1x32xf32>
    tpu.vector_store %arg5[%c13, %c0_31], %54 {strides = array<i32>} : memref<64x32xf32, #tpu.memory_space<vmem>>, vector<1x32xf32>,
    %c49 = arith.constant 49 : index
    %56 = memref.load %arg0[%c49] : memref<64xi32, #tpu.memory_space<smem>>
    %57 = arith.index_cast %56 : i32 to index
    %c0_32 = arith.constant 0 : index
    %58 = vector.load %arg1[%57, %c0_32] : memref<64x32xf32, #tpu.memory_space<vmem>>, vector<1x32xf32>
    %c14 = arith.constant 14 : index
    %c0_33 = arith.constant 0 : index
    %59 = vector.load %arg5[%c14, %c0_33] : memref<64x32xf32, #tpu.memory_space<vmem>>, vector<1x32xf32>
    tpu.vector_store %arg5[%c14, %c0_33], %58 {strides = array<i32>} : memref<64x32xf32, #tpu.memory_space<vmem>>, vector<1x32xf32>,
    %c57 = arith.constant 57 : index
    %60 = memref.load %arg0[%c57] : memref<64xi32, #tpu.memory_space<smem>>
    %61 = arith.index_cast %60 : i32 to index
    %c0_34 = arith.constant 0 : index
    %62 = vector.load %arg1[%61, %c0_34] : memref<64x32xf32, #tpu.memory_space<vmem>>, vector<1x32xf32>
    %c15 = arith.constant 15 : index
    %c0_35 = arith.constant 0 : index
    %63 = vector.load %arg5[%c15, %c0_35] : memref<64x32xf32, #tpu.memory_space<vmem>>, vector<1x32xf32>
    tpu.vector_store %arg5[%c15, %c0_35], %62 {strides = array<i32>} : memref<64x32xf32, #tpu.memory_space<vmem>>, vector<1x32xf32>,
    %c2_36 = arith.constant 2 : index
    %64 = memref.load %arg0[%c2_36] : memref<64xi32, #tpu.memory_space<smem>>
    %65 = arith.index_cast %64 : i32 to index
    %c0_37 = arith.constant 0 : index
    %66 = vector.load %arg1[%65, %c0_37] : memref<64x32xf32, #tpu.memory_space<vmem>>, vector<1x32xf32>
    %c16_38 = arith.constant 16 : index
    %c0_39 = arith.constant 0 : index
    %67 = vector.load %arg5[%c16_38, %c0_39] : memref<64x32xf32, #tpu.memory_space<vmem>>, vector<1x32xf32>
    tpu.vector_store %arg5[%c16_38, %c0_39], %66 {strides = array<i32>} : memref<64x32xf32, #tpu.memory_space<vmem>>, vector<1x32xf32>,
    %c10_40 = arith.constant 10 : index
    %68 = memref.load %arg0[%c10_40] : memref<64xi32, #tpu.memory_space<smem>>
    %69 = arith.index_cast %68 : i32 to index
    %c0_41 = arith.constant 0 : index
    %70 = vector.load %arg1[%69, %c0_41] : memref<64x32xf32, #tpu.memory_space<vmem>>, vector<1x32xf32>
    %c17_42 = arith.constant 17 : index
    %c0_43 = arith.constant 0 : index
    %71 = vector.load %arg5[%c17_42, %c0_43] : memref<64x32xf32, #tpu.memory_space<vmem>>, vector<1x32xf32>
    tpu.vector_store %arg5[%c17_42, %c0_43], %70 {strides = array<i32>} : memref<64x32xf32, #tpu.memory_space<vmem>>, vector<1x32xf32>,
    %c18 = arith.constant 18 : index
    %72 = memref.load %arg0[%c18] : memref<64xi32, #tpu.memory_space<smem>>
    %73 = arith.index_cast %72 : i32 to index
    %c0_44 = arith.constant 0 : index
    %74 = vector.load %arg1[%73, %c0_44] : memref<64x32xf32, #tpu.memory_space<vmem>>, vector<1x32xf32>
    %c18_45 = arith.constant 18 : index
    %c0_46 = arith.constant 0 : index
    %75 = vector.load %arg5[%c18_45, %c0_46] : memref<64x32xf32, #tpu.memory_space<vmem>>, vector<1x32xf32>
    tpu.vector_store %arg5[%c18_45, %c0_46], %74 {strides = array<i32>} : memref<64x32xf32, #tpu.memory_space<vmem>>, vector<1x32xf32>,
    %c26 = arith.constant 26 : index
    %76 = memref.load %arg0[%c26] : memref<64xi32, #tpu.memory_space<smem>>
    %77 = arith.index_cast %76 : i32 to index
    %c0_47 = arith.constant 0 : index
    %78 = vector.load %arg1[%77, %c0_47] : memref<64x32xf32, #tpu.memory_space<vmem>>, vector<1x32xf32>
    %c19 = arith.constant 19 : index
    %c0_48 = arith.constant 0 : index
    %79 = vector.load %arg5[%c19, %c0_48] : memref<64x32xf32, #tpu.memory_space<vmem>>, vector<1x32xf32>
    tpu.vector_store %arg5[%c19, %c0_48], %78 {strides = array<i32>} : memref<64x32xf32, #tpu.memory_space<vmem>>, vector<1x32xf32>,
    %c34 = arith.constant 34 : index
    %80 = memref.load %arg0[%c34] : memref<64xi32, #tpu.memory_space<smem>>
    %81 = arith.index_cast %80 : i32 to index
    %c0_49 = arith.constant 0 : index
    %82 = vector.load %arg1[%81, %c0_49] : memref<64x32xf32, #tpu.memory_space<vmem>>, vector<1x32xf32>
    %c20 = arith.constant 20 : index
    %c0_50 = arith.constant 0 : index
    %83 = vector.load %arg5[%c20, %c0_50] : memref<64x32xf32, #tpu.memory_space<vmem>>, vector<1x32xf32>
    tpu.vector_store %arg5[%c20, %c0_50], %82 {strides = array<i32>} : memref<64x32xf32, #tpu.memory_space<vmem>>, vector<1x32xf32>,
    %c42 = arith.constant 42 : index
    %84 = memref.load %arg0[%c42] : memref<64xi32, #tpu.memory_space<smem>>
    %85 = arith.index_cast %84 : i32 to index
    %c0_51 = arith.constant 0 : index
    %86 = vector.load %arg1[%85, %c0_51] : memref<64x32xf32, #tpu.memory_space<vmem>>, vector<1x32xf32>
    %c21 = arith.constant 21 : index
    %c0_52 = arith.constant 0 : index
    %87 = vector.load %arg5[%c21, %c0_52] : memref<64x32xf32, #tpu.memory_space<vmem>>, vector<1x32xf32>
    tpu.vector_store %arg5[%c21, %c0_52], %86 {strides = array<i32>} : memref<64x32xf32, #tpu.memory_space<vmem>>, vector<1x32xf32>,
    %c50 = arith.constant 50 : index
    %88 = memref.load %arg0[%c50] : memref<64xi32, #tpu.memory_space<smem>>
    %89 = arith.index_cast %88 : i32 to index
    %c0_53 = arith.constant 0 : index
    %90 = vector.load %arg1[%89, %c0_53] : memref<64x32xf32, #tpu.memory_space<vmem>>, vector<1x32xf32>
    %c22 = arith.constant 22 : index
    %c0_54 = arith.constant 0 : index
    %91 = vector.load %arg5[%c22, %c0_54] : memref<64x32xf32, #tpu.memory_space<vmem>>, vector<1x32xf32>
    tpu.vector_store %arg5[%c22, %c0_54], %90 {strides = array<i32>} : memref<64x32xf32, #tpu.memory_space<vmem>>, vector<1x32xf32>,
    %c58 = arith.constant 58 : index
    %92 = memref.load %arg0[%c58] : memref<64xi32, #tpu.memory_space<smem>>
    %93 = arith.index_cast %92 : i32 to index
    %c0_55 = arith.constant 0 : index
    %94 = vector.load %arg1[%93, %c0_55] : memref<64x32xf32, #tpu.memory_space<vmem>>, vector<1x32xf32>
    %c23 = arith.constant 23 : index
    %c0_56 = arith.constant 0 : index
    %95 = vector.load %arg5[%c23, %c0_56] : memref<64x32xf32, #tpu.memory_space<vmem>>, vector<1x32xf32>
    tpu.vector_store %arg5[%c23, %c0_56], %94 {strides = array<i32>} : memref<64x32xf32, #tpu.memory_space<vmem>>, vector<1x32xf32>,
    %c3_57 = arith.constant 3 : index
    %96 = memref.load %arg0[%c3_57] : memref<64xi32, #tpu.memory_space<smem>>
    %97 = arith.index_cast %96 : i32 to index
    %c0_58 = arith.constant 0 : index
    %98 = vector.load %arg1[%97, %c0_58] : memref<64x32xf32, #tpu.memory_space<vmem>>, vector<1x32xf32>
    %c24_59 = arith.constant 24 : index
    %c0_60 = arith.constant 0 : index
    %99 = vector.load %arg5[%c24_59, %c0_60] : memref<64x32xf32, #tpu.memory_space<vmem>>, vector<1x32xf32>
    tpu.vector_store %arg5[%c24_59, %c0_60], %98 {strides = array<i32>} : memref<64x32xf32, #tpu.memory_space<vmem>>, vector<1x32xf32>,
    %c11_61 = arith.constant 11 : index
    %100 = memref.load %arg0[%c11_61] : memref<64xi32, #tpu.memory_space<smem>>
    %101 = arith.index_cast %100 : i32 to index
    %c0_62 = arith.constant 0 : index
    %102 = vector.load %arg1[%101, %c0_62] : memref<64x32xf32, #tpu.memory_space<vmem>>, vector<1x32xf32>
    %c25_63 = arith.constant 25 : index
    %c0_64 = arith.constant 0 : index
    %103 = vector.load %arg5[%c25_63, %c0_64] : memref<64x32xf32, #tpu.memory_space<vmem>>, vector<1x32xf32>
    tpu.vector_store %arg5[%c25_63, %c0_64], %102 {strides = array<i32>} : memref<64x32xf32, #tpu.memory_space<vmem>>, vector<1x32xf32>,
    %c19_65 = arith.constant 19 : index
    %104 = memref.load %arg0[%c19_65] : memref<64xi32, #tpu.memory_space<smem>>
    %105 = arith.index_cast %104 : i32 to index
    %c0_66 = arith.constant 0 : index
    %106 = vector.load %arg1[%105, %c0_66] : memref<64x32xf32, #tpu.memory_space<vmem>>, vector<1x32xf32>
    %c26_67 = arith.constant 26 : index
    %c0_68 = arith.constant 0 : index
    %107 = vector.load %arg5[%c26_67, %c0_68] : memref<64x32xf32, #tpu.memory_space<vmem>>, vector<1x32xf32>
    tpu.vector_store %arg5[%c26_67, %c0_68], %106 {strides = array<i32>} : memref<64x32xf32, #tpu.memory_space<vmem>>, vector<1x32xf32>,
    %c27 = arith.constant 27 : index
    %108 = memref.load %arg0[%c27] : memref<64xi32, #tpu.memory_space<smem>>
    %109 = arith.index_cast %108 : i32 to index
    %c0_69 = arith.constant 0 : index
    %110 = vector.load %arg1[%109, %c0_69] : memref<64x32xf32, #tpu.memory_space<vmem>>, vector<1x32xf32>
    %c27_70 = arith.constant 27 : index
    %c0_71 = arith.constant 0 : index
    %111 = vector.load %arg5[%c27_70, %c0_71] : memref<64x32xf32, #tpu.memory_space<vmem>>, vector<1x32xf32>
    tpu.vector_store %arg5[%c27_70, %c0_71], %110 {strides = array<i32>} : memref<64x32xf32, #tpu.memory_space<vmem>>, vector<1x32xf32>,
    %c35 = arith.constant 35 : index
    %112 = memref.load %arg0[%c35] : memref<64xi32, #tpu.memory_space<smem>>
    %113 = arith.index_cast %112 : i32 to index
    %c0_72 = arith.constant 0 : index
    %114 = vector.load %arg1[%113, %c0_72] : memref<64x32xf32, #tpu.memory_space<vmem>>, vector<1x32xf32>
    %c28 = arith.constant 28 : index
    %c0_73 = arith.constant 0 : index
    %115 = vector.load %arg5[%c28, %c0_73] : memref<64x32xf32, #tpu.memory_space<vmem>>, vector<1x32xf32>
    tpu.vector_store %arg5[%c28, %c0_73], %114 {strides = array<i32>} : memref<64x32xf32, #tpu.memory_space<vmem>>, vector<1x32xf32>,
    %c43 = arith.constant 43 : index
    %116 = memref.load %arg0[%c43] : memref<64xi32, #tpu.memory_space<smem>>
    %117 = arith.index_cast %116 : i32 to index
    %c0_74 = arith.constant 0 : index
    %118 = vector.load %arg1[%117, %c0_74] : memref<64x32xf32, #tpu.memory_space<vmem>>, vector<1x32xf32>
    %c29 = arith.constant 29 : index
    %c0_75 = arith.constant 0 : index
    %119 = vector.load %arg5[%c29, %c0_75] : memref<64x32xf32, #tpu.memory_space<vmem>>, vector<1x32xf32>
    tpu.vector_store %arg5[%c29, %c0_75], %118 {strides = array<i32>} : memref<64x32xf32, #tpu.memory_space<vmem>>, vector<1x32xf32>,
    %c51 = arith.constant 51 : index
    %120 = memref.load %arg0[%c51] : memref<64xi32, #tpu.memory_space<smem>>
    %121 = arith.index_cast %120 : i32 to index
    %c0_76 = arith.constant 0 : index
    %122 = vector.load %arg1[%121, %c0_76] : memref<64x32xf32, #tpu.memory_space<vmem>>, vector<1x32xf32>
    %c30 = arith.constant 30 : index
    %c0_77 = arith.constant 0 : index
    %123 = vector.load %arg5[%c30, %c0_77] : memref<64x32xf32, #tpu.memory_space<vmem>>, vector<1x32xf32>
    tpu.vector_store %arg5[%c30, %c0_77], %122 {strides = array<i32>} : memref<64x32xf32, #tpu.memory_space<vmem>>, vector<1x32xf32>,
    %c59 = arith.constant 59 : index
    %124 = memref.load %arg0[%c59] : memref<64xi32, #tpu.memory_space<smem>>
    %125 = arith.index_cast %124 : i32 to index
    %c0_78 = arith.constant 0 : index
    %126 = vector.load %arg1[%125, %c0_78] : memref<64x32xf32, #tpu.memory_space<vmem>>, vector<1x32xf32>
    %c31 = arith.constant 31 : index
    %c0_79 = arith.constant 0 : index
    %127 = vector.load %arg5[%c31, %c0_79] : memref<64x32xf32, #tpu.memory_space<vmem>>, vector<1x32xf32>
    tpu.vector_store %arg5[%c31, %c0_79], %126 {strides = array<i32>} : memref<64x32xf32, #tpu.memory_space<vmem>>, vector<1x32xf32>,
    %c4_80 = arith.constant 4 : index
    %128 = memref.load %arg0[%c4_80] : memref<64xi32, #tpu.memory_space<smem>>
    %129 = arith.index_cast %128 : i32 to index
    %c0_81 = arith.constant 0 : index
    %130 = vector.load %arg1[%129, %c0_81] : memref<64x32xf32, #tpu.memory_space<vmem>>, vector<1x32xf32>
    %c32_82 = arith.constant 32 : index
    %c0_83 = arith.constant 0 : index
    %131 = vector.load %arg5[%c32_82, %c0_83] : memref<64x32xf32, #tpu.memory_space<vmem>>, vector<1x32xf32>
    tpu.vector_store %arg5[%c32_82, %c0_83], %130 {strides = array<i32>} : memref<64x32xf32, #tpu.memory_space<vmem>>, vector<1x32xf32>,
    %c12_84 = arith.constant 12 : index
    %132 = memref.load %arg0[%c12_84] : memref<64xi32, #tpu.memory_space<smem>>
    %133 = arith.index_cast %132 : i32 to index
    %c0_85 = arith.constant 0 : index
    %134 = vector.load %arg1[%133, %c0_85] : memref<64x32xf32, #tpu.memory_space<vmem>>, vector<1x32xf32>
    %c33_86 = arith.constant 33 : index
    %c0_87 = arith.constant 0 : index
    %135 = vector.load %arg5[%c33_86, %c0_87] : memref<64x32xf32, #tpu.memory_space<vmem>>, vector<1x32xf32>
    tpu.vector_store %arg5[%c33_86, %c0_87], %134 {strides = array<i32>} : memref<64x32xf32, #tpu.memory_space<vmem>>, vector<1x32xf32>,
    %c20_88 = arith.constant 20 : index
    %136 = memref.load %arg0[%c20_88] : memref<64xi32, #tpu.memory_space<smem>>
    %137 = arith.index_cast %136 : i32 to index
    %c0_89 = arith.constant 0 : index
    %138 = vector.load %arg1[%137, %c0_89] : memref<64x32xf32, #tpu.memory_space<vmem>>, vector<1x32xf32>
    %c34_90 = arith.constant 34 : index
    %c0_91 = arith.constant 0 : index
    %139 = vector.load %arg5[%c34_90, %c0_91] : memref<64x32xf32, #tpu.memory_space<vmem>>, vector<1x32xf32>
    tpu.vector_store %arg5[%c34_90, %c0_91], %138 {strides = array<i32>} : memref<64x32xf32, #tpu.memory_space<vmem>>, vector<1x32xf32>,
    %c28_92 = arith.constant 28 : index
    %140 = memref.load %arg0[%c28_92] : memref<64xi32, #tpu.memory_space<smem>>
    %141 = arith.index_cast %140 : i32 to index
    %c0_93 = arith.constant 0 : index
    %142 = vector.load %arg1[%141, %c0_93] : memref<64x32xf32, #tpu.memory_space<vmem>>, vector<1x32xf32>
    %c35_94 = arith.constant 35 : index
    %c0_95 = arith.constant 0 : index
    %143 = vector.load %arg5[%c35_94, %c0_95] : memref<64x32xf32, #tpu.memory_space<vmem>>, vector<1x32xf32>
    tpu.vector_store %arg5[%c35_94, %c0_95], %142 {strides = array<i32>} : memref<64x32xf32, #tpu.memory_space<vmem>>, vector<1x32xf32>,
    %c36 = arith.constant 36 : index
    %144 = memref.load %arg0[%c36] : memref<64xi32, #tpu.memory_space<smem>>
    %145 = arith.index_cast %144 : i32 to index
    %c0_96 = arith.constant 0 : index
    %146 = vector.load %arg1[%145, %c0_96] : memref<64x32xf32, #tpu.memory_space<vmem>>, vector<1x32xf32>
    %c36_97 = arith.constant 36 : index
    %c0_98 = arith.constant 0 : index
    %147 = vector.load %arg5[%c36_97, %c0_98] : memref<64x32xf32, #tpu.memory_space<vmem>>, vector<1x32xf32>
    tpu.vector_store %arg5[%c36_97, %c0_98], %146 {strides = array<i32>} : memref<64x32xf32, #tpu.memory_space<vmem>>, vector<1x32xf32>,
    %c44 = arith.constant 44 : index
    %148 = memref.load %arg0[%c44] : memref<64xi32, #tpu.memory_space<smem>>
    %149 = arith.index_cast %148 : i32 to index
    %c0_99 = arith.constant 0 : index
    %150 = vector.load %arg1[%149, %c0_99] : memref<64x32xf32, #tpu.memory_space<vmem>>, vector<1x32xf32>
    %c37 = arith.constant 37 : index
    %c0_100 = arith.constant 0 : index
    %151 = vector.load %arg5[%c37, %c0_100] : memref<64x32xf32, #tpu.memory_space<vmem>>, vector<1x32xf32>
    tpu.vector_store %arg5[%c37, %c0_100], %150 {strides = array<i32>} : memref<64x32xf32, #tpu.memory_space<vmem>>, vector<1x32xf32>,
    %c52 = arith.constant 52 : index
    %152 = memref.load %arg0[%c52] : memref<64xi32, #tpu.memory_space<smem>>
    %153 = arith.index_cast %152 : i32 to index
    %c0_101 = arith.constant 0 : index
    %154 = vector.load %arg1[%153, %c0_101] : memref<64x32xf32, #tpu.memory_space<vmem>>, vector<1x32xf32>
    %c38 = arith.constant 38 : index
    %c0_102 = arith.constant 0 : index
    %155 = vector.load %arg5[%c38, %c0_102] : memref<64x32xf32, #tpu.memory_space<vmem>>, vector<1x32xf32>
    tpu.vector_store %arg5[%c38, %c0_102], %154 {strides = array<i32>} : memref<64x32xf32, #tpu.memory_space<vmem>>, vector<1x32xf32>,
    %c60 = arith.constant 60 : index
    %156 = memref.load %arg0[%c60] : memref<64xi32, #tpu.memory_space<smem>>
    %157 = arith.index_cast %156 : i32 to index
    %c0_103 = arith.constant 0 : index
    %158 = vector.load %arg1[%157, %c0_103] : memref<64x32xf32, #tpu.memory_space<vmem>>, vector<1x32xf32>
    %c39 = arith.constant 39 : index
    %c0_104 = arith.constant 0 : index
    %159 = vector.load %arg5[%c39, %c0_104] : memref<64x32xf32, #tpu.memory_space<vmem>>, vector<1x32xf32>
    tpu.vector_store %arg5[%c39, %c0_104], %158 {strides = array<i32>} : memref<64x32xf32, #tpu.memory_space<vmem>>, vector<1x32xf32>,
    %c5_105 = arith.constant 5 : index
    %160 = memref.load %arg0[%c5_105] : memref<64xi32, #tpu.memory_space<smem>>
    %161 = arith.index_cast %160 : i32 to index
    %c0_106 = arith.constant 0 : index
    %162 = vector.load %arg1[%161, %c0_106] : memref<64x32xf32, #tpu.memory_space<vmem>>, vector<1x32xf32>
    %c40_107 = arith.constant 40 : index
    %c0_108 = arith.constant 0 : index
    %163 = vector.load %arg5[%c40_107, %c0_108] : memref<64x32xf32, #tpu.memory_space<vmem>>, vector<1x32xf32>
    tpu.vector_store %arg5[%c40_107, %c0_108], %162 {strides = array<i32>} : memref<64x32xf32, #tpu.memory_space<vmem>>, vector<1x32xf32>,
    %c13_109 = arith.constant 13 : index
    %164 = memref.load %arg0[%c13_109] : memref<64xi32, #tpu.memory_space<smem>>
    %165 = arith.index_cast %164 : i32 to index
    %c0_110 = arith.constant 0 : index
    %166 = vector.load %arg1[%165, %c0_110] : memref<64x32xf32, #tpu.memory_space<vmem>>, vector<1x32xf32>
    %c41_111 = arith.constant 41 : index
    %c0_112 = arith.constant 0 : index
    %167 = vector.load %arg5[%c41_111, %c0_112] : memref<64x32xf32, #tpu.memory_space<vmem>>, vector<1x32xf32>
    tpu.vector_store %arg5[%c41_111, %c0_112], %166 {strides = array<i32>} : memref<64x32xf32, #tpu.memory_space<vmem>>, vector<1x32xf32>,
    %c21_113 = arith.constant 21 : index
    %168 = memref.load %arg0[%c21_113] : memref<64xi32, #tpu.memory_space<smem>>
    %169 = arith.index_cast %168 : i32 to index
    %c0_114 = arith.constant 0 : index
    %170 = vector.load %arg1[%169, %c0_114] : memref<64x32xf32, #tpu.memory_space<vmem>>, vector<1x32xf32>
    %c42_115 = arith.constant 42 : index
    %c0_116 = arith.constant 0 : index
    %171 = vector.load %arg5[%c42_115, %c0_116] : memref<64x32xf32, #tpu.memory_space<vmem>>, vector<1x32xf32>
    tpu.vector_store %arg5[%c42_115, %c0_116], %170 {strides = array<i32>} : memref<64x32xf32, #tpu.memory_space<vmem>>, vector<1x32xf32>,
    %c29_117 = arith.constant 29 : index
    %172 = memref.load %arg0[%c29_117] : memref<64xi32, #tpu.memory_space<smem>>
    %173 = arith.index_cast %172 : i32 to index
    %c0_118 = arith.constant 0 : index
    %174 = vector.load %arg1[%173, %c0_118] : memref<64x32xf32, #tpu.memory_space<vmem>>, vector<1x32xf32>
    %c43_119 = arith.constant 43 : index
    %c0_120 = arith.constant 0 : index
    %175 = vector.load %arg5[%c43_119, %c0_120] : memref<64x32xf32, #tpu.memory_space<vmem>>, vector<1x32xf32>
    tpu.vector_store %arg5[%c43_119, %c0_120], %174 {strides = array<i32>} : memref<64x32xf32, #tpu.memory_space<vmem>>, vector<1x32xf32>,
    %c37_121 = arith.constant 37 : index
    %176 = memref.load %arg0[%c37_121] : memref<64xi32, #tpu.memory_space<smem>>
    %177 = arith.index_cast %176 : i32 to index
    %c0_122 = arith.constant 0 : index
    %178 = vector.load %arg1[%177, %c0_122] : memref<64x32xf32, #tpu.memory_space<vmem>>, vector<1x32xf32>
    %c44_123 = arith.constant 44 : index
    %c0_124 = arith.constant 0 : index
    %179 = vector.load %arg5[%c44_123, %c0_124] : memref<64x32xf32, #tpu.memory_space<vmem>>, vector<1x32xf32>
    tpu.vector_store %arg5[%c44_123, %c0_124], %178 {strides = array<i32>} : memref<64x32xf32, #tpu.memory_space<vmem>>, vector<1x32xf32>,
    %c45 = arith.constant 45 : index
    %180 = memref.load %arg0[%c45] : memref<64xi32, #tpu.memory_space<smem>>
    %181 = arith.index_cast %180 : i32 to index
    %c0_125 = arith.constant 0 : index
    %182 = vector.load %arg1[%181, %c0_125] : memref<64x32xf32, #tpu.memory_space<vmem>>, vector<1x32xf32>
    %c45_126 = arith.constant 45 : index
    %c0_127 = arith.constant 0 : index
    %183 = vector.load %arg5[%c45_126, %c0_127] : memref<64x32xf32, #tpu.memory_space<vmem>>, vector<1x32xf32>
    tpu.vector_store %arg5[%c45_126, %c0_127], %182 {strides = array<i32>} : memref<64x32xf32, #tpu.memory_space<vmem>>, vector<1x32xf32>,
    %c53 = arith.constant 53 : index
    %184 = memref.load %arg0[%c53] : memref<64xi32, #tpu.memory_space<smem>>
    %185 = arith.index_cast %184 : i32 to index
    %c0_128 = arith.constant 0 : index
    %186 = vector.load %arg1[%185, %c0_128] : memref<64x32xf32, #tpu.memory_space<vmem>>, vector<1x32xf32>
    %c46 = arith.constant 46 : index
    %c0_129 = arith.constant 0 : index
    %187 = vector.load %arg5[%c46, %c0_129] : memref<64x32xf32, #tpu.memory_space<vmem>>, vector<1x32xf32>
    tpu.vector_store %arg5[%c46, %c0_129], %186 {strides = array<i32>} : memref<64x32xf32, #tpu.memory_space<vmem>>, vector<1x32xf32>,
    %c61 = arith.constant 61 : index
    %188 = memref.load %arg0[%c61] : memref<64xi32, #tpu.memory_space<smem>>
    %189 = arith.index_cast %188 : i32 to index
    %c0_130 = arith.constant 0 : index
    %190 = vector.load %arg1[%189, %c0_130] : memref<64x32xf32, #tpu.memory_space<vmem>>, vector<1x32xf32>
    %c47 = arith.constant 47 : index
    %c0_131 = arith.constant 0 : index
    %191 = vector.load %arg5[%c47, %c0_131] : memref<64x32xf32, #tpu.memory_space<vmem>>, vector<1x32xf32>
    tpu.vector_store %arg5[%c47, %c0_131], %190 {strides = array<i32>} : memref<64x32xf32, #tpu.memory_space<vmem>>, vector<1x32xf32>,
    %c6_132 = arith.constant 6 : index
    %192 = memref.load %arg0[%c6_132] : memref<64xi32, #tpu.memory_space<smem>>
    %193 = arith.index_cast %192 : i32 to index
    %c0_133 = arith.constant 0 : index
    %194 = vector.load %arg1[%193, %c0_133] : memref<64x32xf32, #tpu.memory_space<vmem>>, vector<1x32xf32>
    %c48_134 = arith.constant 48 : index
    %c0_135 = arith.constant 0 : index
    %195 = vector.load %arg5[%c48_134, %c0_135] : memref<64x32xf32, #tpu.memory_space<vmem>>, vector<1x32xf32>
    tpu.vector_store %arg5[%c48_134, %c0_135], %194 {strides = array<i32>} : memref<64x32xf32, #tpu.memory_space<vmem>>, vector<1x32xf32>,
    %c14_136 = arith.constant 14 : index
    %196 = memref.load %arg0[%c14_136] : memref<64xi32, #tpu.memory_space<smem>>
    %197 = arith.index_cast %196 : i32 to index
    %c0_137 = arith.constant 0 : index
    %198 = vector.load %arg1[%197, %c0_137] : memref<64x32xf32, #tpu.memory_space<vmem>>, vector<1x32xf32>
    %c49_138 = arith.constant 49 : index
    %c0_139 = arith.constant 0 : index
    %199 = vector.load %arg5[%c49_138, %c0_139] : memref<64x32xf32, #tpu.memory_space<vmem>>, vector<1x32xf32>
    tpu.vector_store %arg5[%c49_138, %c0_139], %198 {strides = array<i32>} : memref<64x32xf32, #tpu.memory_space<vmem>>, vector<1x32xf32>,
    %c22_140 = arith.constant 22 : index
    %200 = memref.load %arg0[%c22_140] : memref<64xi32, #tpu.memory_space<smem>>
    %201 = arith.index_cast %200 : i32 to index
    %c0_141 = arith.constant 0 : index
    %202 = vector.load %arg1[%201, %c0_141] : memref<64x32xf32, #tpu.memory_space<vmem>>, vector<1x32xf32>
    %c50_142 = arith.constant 50 : index
    %c0_143 = arith.constant 0 : index
    %203 = vector.load %arg5[%c50_142, %c0_143] : memref<64x32xf32, #tpu.memory_space<vmem>>, vector<1x32xf32>
    tpu.vector_store %arg5[%c50_142, %c0_143], %202 {strides = array<i32>} : memref<64x32xf32, #tpu.memory_space<vmem>>, vector<1x32xf32>,
    %c30_144 = arith.constant 30 : index
    %204 = memref.load %arg0[%c30_144] : memref<64xi32, #tpu.memory_space<smem>>
    %205 = arith.index_cast %204 : i32 to index
    %c0_145 = arith.constant 0 : index
    %206 = vector.load %arg1[%205, %c0_145] : memref<64x32xf32, #tpu.memory_space<vmem>>, vector<1x32xf32>
    %c51_146 = arith.constant 51 : index
    %c0_147 = arith.constant 0 : index
    %207 = vector.load %arg5[%c51_146, %c0_147] : memref<64x32xf32, #tpu.memory_space<vmem>>, vector<1x32xf32>
    tpu.vector_store %arg5[%c51_146, %c0_147], %206 {strides = array<i32>} : memref<64x32xf32, #tpu.memory_space<vmem>>, vector<1x32xf32>,
    %c38_148 = arith.constant 38 : index
    %208 = memref.load %arg0[%c38_148] : memref<64xi32, #tpu.memory_space<smem>>
    %209 = arith.index_cast %208 : i32 to index
    %c0_149 = arith.constant 0 : index
    %210 = vector.load %arg1[%209, %c0_149] : memref<64x32xf32, #tpu.memory_space<vmem>>, vector<1x32xf32>
    %c52_150 = arith.constant 52 : index
    %c0_151 = arith.constant 0 : index
    %211 = vector.load %arg5[%c52_150, %c0_151] : memref<64x32xf32, #tpu.memory_space<vmem>>, vector<1x32xf32>
    tpu.vector_store %arg5[%c52_150, %c0_151], %210 {strides = array<i32>} : memref<64x32xf32, #tpu.memory_space<vmem>>, vector<1x32xf32>,
    %c46_152 = arith.constant 46 : index
    %212 = memref.load %arg0[%c46_152] : memref<64xi32, #tpu.memory_space<smem>>
    %213 = arith.index_cast %212 : i32 to index
    %c0_153 = arith.constant 0 : index
    %214 = vector.load %arg1[%213, %c0_153] : memref<64x32xf32, #tpu.memory_space<vmem>>, vector<1x32xf32>
    %c53_154 = arith.constant 53 : index
    %c0_155 = arith.constant 0 : index
    %215 = vector.load %arg5[%c53_154, %c0_155] : memref<64x32xf32, #tpu.memory_space<vmem>>, vector<1x32xf32>
    tpu.vector_store %arg5[%c53_154, %c0_155], %214 {strides = array<i32>} : memref<64x32xf32, #tpu.memory_space<vmem>>, vector<1x32xf32>,
    %c54 = arith.constant 54 : index
    %216 = memref.load %arg0[%c54] : memref<64xi32, #tpu.memory_space<smem>>
    %217 = arith.index_cast %216 : i32 to index
    %c0_156 = arith.constant 0 : index
    %218 = vector.load %arg1[%217, %c0_156] : memref<64x32xf32, #tpu.memory_space<vmem>>, vector<1x32xf32>
    %c54_157 = arith.constant 54 : index
    %c0_158 = arith.constant 0 : index
    %219 = vector.load %arg5[%c54_157, %c0_158] : memref<64x32xf32, #tpu.memory_space<vmem>>, vector<1x32xf32>
    tpu.vector_store %arg5[%c54_157, %c0_158], %218 {strides = array<i32>} : memref<64x32xf32, #tpu.memory_space<vmem>>, vector<1x32xf32>,
    %c62 = arith.constant 62 : index
    %220 = memref.load %arg0[%c62] : memref<64xi32, #tpu.memory_space<smem>>
    %221 = arith.index_cast %220 : i32 to index
    %c0_159 = arith.constant 0 : index
    %222 = vector.load %arg1[%221, %c0_159] : memref<64x32xf32, #tpu.memory_space<vmem>>, vector<1x32xf32>
    %c55 = arith.constant 55 : index
    %c0_160 = arith.constant 0 : index
    %223 = vector.load %arg5[%c55, %c0_160] : memref<64x32xf32, #tpu.memory_space<vmem>>, vector<1x32xf32>
    tpu.vector_store %arg5[%c55, %c0_160], %222 {strides = array<i32>} : memref<64x32xf32, #tpu.memory_space<vmem>>, vector<1x32xf32>,
    %c7_161 = arith.constant 7 : index
    %224 = memref.load %arg0[%c7_161] : memref<64xi32, #tpu.memory_space<smem>>
    %225 = arith.index_cast %224 : i32 to index
    %c0_162 = arith.constant 0 : index
    %226 = vector.load %arg1[%225, %c0_162] : memref<64x32xf32, #tpu.memory_space<vmem>>, vector<1x32xf32>
    %c56_163 = arith.constant 56 : index
    %c0_164 = arith.constant 0 : index
    %227 = vector.load %arg5[%c56_163, %c0_164] : memref<64x32xf32, #tpu.memory_space<vmem>>, vector<1x32xf32>
    tpu.vector_store %arg5[%c56_163, %c0_164], %226 {strides = array<i32>} : memref<64x32xf32, #tpu.memory_space<vmem>>, vector<1x32xf32>,
    %c15_165 = arith.constant 15 : index
    %228 = memref.load %arg0[%c15_165] : memref<64xi32, #tpu.memory_space<smem>>
    %229 = arith.index_cast %228 : i32 to index
    %c0_166 = arith.constant 0 : index
    %230 = vector.load %arg1[%229, %c0_166] : memref<64x32xf32, #tpu.memory_space<vmem>>, vector<1x32xf32>
    %c57_167 = arith.constant 57 : index
    %c0_168 = arith.constant 0 : index
    %231 = vector.load %arg5[%c57_167, %c0_168] : memref<64x32xf32, #tpu.memory_space<vmem>>, vector<1x32xf32>
    tpu.vector_store %arg5[%c57_167, %c0_168], %230 {strides = array<i32>} : memref<64x32xf32, #tpu.memory_space<vmem>>, vector<1x32xf32>,
    %c23_169 = arith.constant 23 : index
    %232 = memref.load %arg0[%c23_169] : memref<64xi32, #tpu.memory_space<smem>>
    %233 = arith.index_cast %232 : i32 to index
    %c0_170 = arith.constant 0 : index
    %234 = vector.load %arg1[%233, %c0_170] : memref<64x32xf32, #tpu.memory_space<vmem>>, vector<1x32xf32>
    %c58_171 = arith.constant 58 : index
    %c0_172 = arith.constant 0 : index
    %235 = vector.load %arg5[%c58_171, %c0_172] : memref<64x32xf32, #tpu.memory_space<vmem>>, vector<1x32xf32>
    tpu.vector_store %arg5[%c58_171, %c0_172], %234 {strides = array<i32>} : memref<64x32xf32, #tpu.memory_space<vmem>>, vector<1x32xf32>,
    %c31_173 = arith.constant 31 : index
    %236 = memref.load %arg0[%c31_173] : memref<64xi32, #tpu.memory_space<smem>>
    %237 = arith.index_cast %236 : i32 to index
    %c0_174 = arith.constant 0 : index
    %238 = vector.load %arg1[%237, %c0_174] : memref<64x32xf32, #tpu.memory_space<vmem>>, vector<1x32xf32>
    %c59_175 = arith.constant 59 : index
    %c0_176 = arith.constant 0 : index
    %239 = vector.load %arg5[%c59_175, %c0_176] : memref<64x32xf32, #tpu.memory_space<vmem>>, vector<1x32xf32>
    tpu.vector_store %arg5[%c59_175, %c0_176], %238 {strides = array<i32>} : memref<64x32xf32, #tpu.memory_space<vmem>>, vector<1x32xf32>,
    %c39_177 = arith.constant 39 : index
    %240 = memref.load %arg0[%c39_177] : memref<64xi32, #tpu.memory_space<smem>>
    %241 = arith.index_cast %240 : i32 to index
    %c0_178 = arith.constant 0 : index
    %242 = vector.load %arg1[%241, %c0_178] : memref<64x32xf32, #tpu.memory_space<vmem>>, vector<1x32xf32>
    %c60_179 = arith.constant 60 : index
    %c0_180 = arith.constant 0 : index
    %243 = vector.load %arg5[%c60_179, %c0_180] : memref<64x32xf32, #tpu.memory_space<vmem>>, vector<1x32xf32>
    tpu.vector_store %arg5[%c60_179, %c0_180], %242 {strides = array<i32>} : memref<64x32xf32, #tpu.memory_space<vmem>>, vector<1x32xf32>,
    %c47_181 = arith.constant 47 : index
    %244 = memref.load %arg0[%c47_181] : memref<64xi32, #tpu.memory_space<smem>>
    %245 = arith.index_cast %244 : i32 to index
    %c0_182 = arith.constant 0 : index
    %246 = vector.load %arg1[%245, %c0_182] : memref<64x32xf32, #tpu.memory_space<vmem>>, vector<1x32xf32>
    %c61_183 = arith.constant 61 : index
    %c0_184 = arith.constant 0 : index
    %247 = vector.load %arg5[%c61_183, %c0_184] : memref<64x32xf32, #tpu.memory_space<vmem>>, vector<1x32xf32>
    tpu.vector_store %arg5[%c61_183, %c0_184], %246 {strides = array<i32>} : memref<64x32xf32, #tpu.memory_space<vmem>>, vector<1x32xf32>,
    %c55_185 = arith.constant 55 : index
    %248 = memref.load %arg0[%c55_185] : memref<64xi32, #tpu.memory_space<smem>>
    %249 = arith.index_cast %248 : i32 to index
    %c0_186 = arith.constant 0 : index
    %250 = vector.load %arg1[%249, %c0_186] : memref<64x32xf32, #tpu.memory_space<vmem>>, vector<1x32xf32>
    %c62_187 = arith.constant 62 : index
    %c0_188 = arith.constant 0 : index
    %251 = vector.load %arg5[%c62_187, %c0_188] : memref<64x32xf32, #tpu.memory_space<vmem>>, vector<1x32xf32>
    tpu.vector_store %arg5[%c62_187, %c0_188], %250 {strides = array<i32>} : memref<64x32xf32, #tpu.memory_space<vmem>>, vector<1x32xf32>,
    %c63 = arith.constant 63 : index
    %252 = memref.load %arg0[%c63] : memref<64xi32, #tpu.memory_space<smem>>
    %253 = arith.index_cast %252 : i32 to index
    %c0_189 = arith.constant 0 : index
    %254 = vector.load %arg1[%253, %c0_189] : memref<64x32xf32, #tpu.memory_space<vmem>>, vector<1x32xf32>
    %c63_190 = arith.constant 63 : index
    %c0_191 = arith.constant 0 : index
    %255 = vector.load %arg5[%c63_190, %c0_191] : memref<64x32xf32, #tpu.memory_space<vmem>>, vector<1x32xf32>
    tpu.vector_store %arg5[%c63_190, %c0_191], %254 {strides = array<i32>} : memref<64x32xf32, #tpu.memory_space<vmem>>, vector<1x32xf32>,
    %c0_192 = arith.constant 0 : index
    %c0_193 = arith.constant 0 : index
    %256 = vector.load %arg2[%c0_192, %c0_193] : memref<65x32xf32, #tpu.memory_space<vmem>>, vector<32x32xf32>
    %c32_194 = arith.constant 32 : index
    %c0_195 = arith.constant 0 : index
    %257 = vector.load %arg2[%c32_194, %c0_195] : memref<65x32xf32, #tpu.memory_space<vmem>>, vector<1x32xf32>
    %c33_196 = arith.constant 33 : index
    %c0_197 = arith.constant 0 : index
    %258 = vector.load %arg2[%c33_196, %c0_197] : memref<65x32xf32, #tpu.memory_space<vmem>>, vector<32x32xf32>
    %c0_198 = arith.constant 0 : index
    %c0_199 = arith.constant 0 : index
    %259 = vector.load %arg5[%c0_198, %c0_199] : memref<64x32xf32, #tpu.memory_space<vmem>>, vector<64x32xf32>
    %cst = arith.constant dense<0.000000e+00> : vector<64x32xf32>
    %260 = tpu.matmul %259, %256, %cst {dimension_numbers = #tpu.dot_dimension_numbers<[1], [0], [0], [1], [0, 0, 1, 1], [], []>, precision = #tpu.contract_precision<fp32>} : vector<64x32xf32>, vector<32x32xf32>, vector<64x32xf32> -> vector<64x32xf32>
    %261 = vector.broadcast %257 : vector<1x32xf32> to vector<64x32xf32>
    %262 = arith.addf %260, %261 : vector<64x32xf32>
    %cst_200 = arith.constant 0.000000e+00 : f32
    %263 = vector.broadcast %cst_200 : f32 to vector<8x32xf32>
    %264 = vector.extract_strided_slice %262 {offsets = [0, 0], sizes = [8, 32], strides = [1, 1]} : vector<64x32xf32> to vector<8x32xf32>
    %cst_201 = arith.constant dense<0.000000e+00> : vector<8x32xf32>
    %265 = tpu.matmul %263, %258, %cst_201 {dimension_numbers = #tpu.dot_dimension_numbers<[1], [0], [0], [1], [0, 0, 1, 1], [], []>, precision = #tpu.contract_precision<fp32>} : vector<8x32xf32>, vector<32x32xf32>, vector<8x32xf32> -> vector<8x32xf32>
    %266 = arith.addf %264, %265 : vector<8x32xf32>
    %267 = math.tanh %266 : vector<8x32xf32>
    %268 = vector.extract_strided_slice %262 {offsets = [8, 0], sizes = [8, 32], strides = [1, 1]} : vector<64x32xf32> to vector<8x32xf32>
    %cst_202 = arith.constant dense<0.000000e+00> : vector<8x32xf32>
    %269 = tpu.matmul %267, %258, %cst_202 {dimension_numbers = #tpu.dot_dimension_numbers<[1], [0], [0], [1], [0, 0, 1, 1], [], []>, precision = #tpu.contract_precision<fp32>} : vector<8x32xf32>, vector<32x32xf32>, vector<8x32xf32> -> vector<8x32xf32>
    %270 = arith.addf %268, %269 : vector<8x32xf32>
    %271 = math.tanh %270 : vector<8x32xf32>
    %272 = vector.extract_strided_slice %262 {offsets = [16, 0], sizes = [8, 32], strides = [1, 1]} : vector<64x32xf32> to vector<8x32xf32>
    %cst_203 = arith.constant dense<0.000000e+00> : vector<8x32xf32>
    %273 = tpu.matmul %271, %258, %cst_203 {dimension_numbers = #tpu.dot_dimension_numbers<[1], [0], [0], [1], [0, 0, 1, 1], [], []>, precision = #tpu.contract_precision<fp32>} : vector<8x32xf32>, vector<32x32xf32>, vector<8x32xf32> -> vector<8x32xf32>
    %274 = arith.addf %272, %273 : vector<8x32xf32>
    %275 = math.tanh %274 : vector<8x32xf32>
    %276 = vector.extract_strided_slice %262 {offsets = [24, 0], sizes = [8, 32], strides = [1, 1]} : vector<64x32xf32> to vector<8x32xf32>
    %cst_204 = arith.constant dense<0.000000e+00> : vector<8x32xf32>
    %277 = tpu.matmul %275, %258, %cst_204 {dimension_numbers = #tpu.dot_dimension_numbers<[1], [0], [0], [1], [0, 0, 1, 1], [], []>, precision = #tpu.contract_precision<fp32>} : vector<8x32xf32>, vector<32x32xf32>, vector<8x32xf32> -> vector<8x32xf32>
    %278 = arith.addf %276, %277 : vector<8x32xf32>
    %279 = math.tanh %278 : vector<8x32xf32>
    %280 = vector.extract_strided_slice %262 {offsets = [32, 0], sizes = [8, 32], strides = [1, 1]} : vector<64x32xf32> to vector<8x32xf32>
    %cst_205 = arith.constant dense<0.000000e+00> : vector<8x32xf32>
    %281 = tpu.matmul %279, %258, %cst_205 {dimension_numbers = #tpu.dot_dimension_numbers<[1], [0], [0], [1], [0, 0, 1, 1], [], []>, precision = #tpu.contract_precision<fp32>} : vector<8x32xf32>, vector<32x32xf32>, vector<8x32xf32> -> vector<8x32xf32>
    %282 = arith.addf %280, %281 : vector<8x32xf32>
    %283 = math.tanh %282 : vector<8x32xf32>
    %284 = vector.extract_strided_slice %262 {offsets = [40, 0], sizes = [8, 32], strides = [1, 1]} : vector<64x32xf32> to vector<8x32xf32>
    %cst_206 = arith.constant dense<0.000000e+00> : vector<8x32xf32>
    %285 = tpu.matmul %283, %258, %cst_206 {dimension_numbers = #tpu.dot_dimension_numbers<[1], [0], [0], [1], [0, 0, 1, 1], [], []>, precision = #tpu.contract_precision<fp32>} : vector<8x32xf32>, vector<32x32xf32>, vector<8x32xf32> -> vector<8x32xf32>
    %286 = arith.addf %284, %285 : vector<8x32xf32>
    %287 = math.tanh %286 : vector<8x32xf32>
    %288 = vector.extract_strided_slice %262 {offsets = [48, 0], sizes = [8, 32], strides = [1, 1]} : vector<64x32xf32> to vector<8x32xf32>
    %cst_207 = arith.constant dense<0.000000e+00> : vector<8x32xf32>
    %289 = tpu.matmul %287, %258, %cst_207 {dimension_numbers = #tpu.dot_dimension_numbers<[1], [0], [0], [1], [0, 0, 1, 1], [], []>, precision = #tpu.contract_precision<fp32>} : vector<8x32xf32>, vector<32x32xf32>, vector<8x32xf32> -> vector<8x32xf32>
    %290 = arith.addf %288, %289 : vector<8x32xf32>
    %291 = math.tanh %290 : vector<8x32xf32>
    %292 = vector.extract_strided_slice %262 {offsets = [56, 0], sizes = [8, 32], strides = [1, 1]} : vector<64x32xf32> to vector<8x32xf32>
    %cst_208 = arith.constant dense<0.000000e+00> : vector<8x32xf32>
    %293 = tpu.matmul %291, %258, %cst_208 {dimension_numbers = #tpu.dot_dimension_numbers<[1], [0], [0], [1], [0, 0, 1, 1], [], []>, precision = #tpu.contract_precision<fp32>} : vector<8x32xf32>, vector<32x32xf32>, vector<8x32xf32> -> vector<8x32xf32>
    %294 = arith.addf %292, %293 : vector<8x32xf32>
    %295 = math.tanh %294 : vector<8x32xf32>
    %c0_209 = arith.constant 0 : index
    %c0_210 = arith.constant 0 : index
    %296 = vector.load %arg3[%c0_209, %c0_210] : memref<33x3xf32, #tpu.memory_space<vmem>>, vector<32x3xf32>
    %cst_211 = arith.constant dense<0.000000e+00> : vector<8x3xf32>
    %297 = tpu.matmul %295, %296, %cst_211 {dimension_numbers = #tpu.dot_dimension_numbers<[1], [0], [0], [1], [0, 0, 1, 1], [], []>, precision = #tpu.contract_precision<fp32>} : vector<8x32xf32>, vector<32x3xf32>, vector<8x3xf32> -> vector<8x3xf32>
    %c32_212 = arith.constant 32 : index
    %c0_213 = arith.constant 0 : index
    %298 = vector.load %arg3[%c32_212, %c0_213] : memref<33x3xf32, #tpu.memory_space<vmem>>, vector<1x3xf32>
    %299 = vector.broadcast %298 : vector<1x3xf32> to vector<8x3xf32>
    %300 = arith.addf %297, %299 : vector<8x3xf32>
    %c0_214 = arith.constant 0 : index
    %c0_215 = arith.constant 0 : index
    %301 = vector.load %arg4[%c0_214, %c0_215] : memref<8x3xf32, #tpu.memory_space<vmem>>, vector<8x3xf32>
    tpu.vector_store %arg4[%c0_214, %c0_215], %300 {strides = array<i32>} : memref<8x3xf32, #tpu.memory_space<vmem>>, vector<8x3xf32>,
    return
  }
}

</mosaic_0001>

<bundles_post_ra>
// kernel: tpu_custom_call.1
= control target key start
LH: loop header
LB: loop body
LE: loop exit
PB: predicated region body
PF: predicated region fallthrough
CT: control target
= control target key end

     0   :  { %9 = vsyncpa [#allocation4], 0  ;;  %s2614_s18 = smov [#allocation3]   ;;  %s3484_s0 = inlined_call_operand.vmem [shape: s32[64], index: 0, kind: input, shape index: {}]   ;;  %s3485_s1 = inlined_call_operand.vmem [shape: f32[64,32], index: 1, kind: input, shape index: {}]   ;;  %s3486_s2 = inlined_call_operand.vmem [shape: f32[65,32], index: 2, kind: input, shape index: {}]   ;;  %s3487_s3 = inlined_call_operand.vmem [shape: f32[33,3], index: 3, kind: input, shape index: {}]   ;;  %s3488_s4 = inlined_call_operand.vmem [shape: f32[8,3], index: 4, kind: output, shape index: {}]  }
   0x1   :  { %s15_s17 = sshll.u32 %s3484_s0, 4  ;;  %s16_s17 = int_to_ptr.vmem [resolvable:$true] %s15_s17 }
   0x2   :  { %18 = dma.vmem_to_smem %s16_s17, 16, %s2614_s18, [#allocation4]  }
   0x3   :  { %2612 = dma.done.wait [#allocation4], 16  }
   0x4   :  { %2613 = vsyncadd [#allocation4], 4294967280 }
   0x5   :  { %29 = sfence }
   0x6   :  { %v290_v0 = vld [vmem:[%s3486_s2 + $0x18] sm:$0xff]  ;;  %v289_v1 = vld [vmem:[%s3486_s2 + $0x10] sm:$0xff]  ;;  %v288_v2 = vld [vmem:[%s3486_s2 + $0x8] sm:$0xff]  ;;  %s2653_s25 = sld [smem:[#allocation3]]  ;;  %vm33_vm0 = vcmask 253952   ;;  %vm305_vm1 = vcmask 261120  }
   0x7   :  { %v2655_v3 = vand.u32 4294901760, %v290_v0  ;;  %v2657_v4 = vand.u32 4294901760, %v289_v1  ;;  %v2659_v5 = vand.u32 4294901760, %v288_v2  ;;  %v287_v6 = vld [vmem:[%s3486_s2] sm:$0xff]  ;;  %s2664_s27 = sld [smem:[#allocation3 + $0x8]]  ;;  %v294_v40 = vld [vmem:[%s3486_s2 + $0x31] sm:$0xff] }
   0x8   :  { %v2666_v7 = vand.u32 4294901760, %v287_v6  ;;  %s2668_s28 = sld [smem:[#allocation3 + $0x10]]  ;;  %v295_v8 = vld [vmem:[%s3486_s2 + $0x39] sm:$0xff]  ;;  %v2811_v45 = vand.u32 4294901760, %v294_v40  ;;  %vm2446_vm2 = vcmask 23552  }
   0x9   :  { %v428_v9 = vsub.f32 %v290_v0, %v2655_v3  ;;  %v2675_v10 = vsub.f32 %v289_v1, %v2657_v4  ;;  %562 = vmatpush.msra.mxu3 %v2655_v3  ;;  %v2679_v11 = vsub.f32 %v288_v2, %v2659_v5  ;;  %343 = vmatpush.msra.mxu0 %v2655_v3  ;;  %s2682_s5 = sld [smem:[#allocation3 + $0x18]]  ;;  %v2684_v12 = vand.u32 4294901760, %v295_v8 }
   0xa   :  { %v2687_v13 = vsub.f32 %v287_v6, %v2666_v7  ;;  %s2689_s6 = sld [smem:[#allocation3 + $0x20]]  ;;  %v2829_v50 = vsub.f32 %v294_v40, %v2811_v45 }
   0xb   :  { %498 = vmatpush.msra.mxu2 %v428_v9  ;;  %564 = vmatpush.msra.mxu3 %v2657_v4  ;;  %s2692_s7 = sld [smem:[#allocation3 + $0x28]]  ;;  %v429_v14 = vand.u32 4294901760, %v428_v9  ;;  %v2695_v15 = vsub.f32 %v295_v8, %v2684_v12  ;;  %v435_v16 = vand.u32 4294901760, %v2675_v10  ;;  %v441_v17 = vand.u32 4294901760, %v2679_v11 }
   0xc   :  { %s31_s10 = scalar_lea.vmem %s3485_s1, %s2653_s25  ;;  %s2703_s11 = sld [smem:[#allocation3 + $0x30]]  ;;  %345 = vmatpush.msra.mxu0 %v2657_v4  ;;  %v447_v18 = vand.u32 4294901760, %v2687_v13  ;;  %v2852_v57 = vand.u32 4294901760, %v2829_v50 }
   0xd   :  { %501 = vmatpush.msra.mxu2 %v2675_v10  ;;  %566 = vmatpush.msra.mxu3 %v2659_v5  ;;  %v32_v19 = vld [vmem:[%s31_s10] sm:$0x1]  ;;  %s36_s14 = scalar_lea.vmem %s3485_s1, %s2664_s27  ;;  %s2713_s15 = sld [smem:[#allocation3 + $0x38]]  ;;  %v430_v20 = vsub.f32 %v428_v9, %v429_v14  ;;  %v2716_v21 = vand.u32 4294901760, %v2695_v15  ;;  %v436_v22 = vsub.f32 %v2675_v10, %v435_v16  ;;  %v442_v23 = vsub.f32 %v2679_v11, %v441_v17  ;;  %v293_v10 = vld [vmem:[%s3486_s2 + $0x29] sm:$0xff] }
   0xe   :  { %34 = vst.msk [vmem:[#allocation2] sm:$0x1] %vm33_vm0, %v32_v19  ;;  %v37_v24 = vld [vmem:[%s36_s14] sm:$0x1]  ;;  %s40_s18 = scalar_lea.vmem %s3485_s1, %s2668_s28  ;;  %347 = vmatpush.msra.mxu0 %v2659_v5  ;;  %v448_v25 = vsub.f32 %v2687_v13, %v447_v18  ;;  %s2729_s19 = sld [smem:[#allocation3 + $0x1]]  ;;  %v785_v59 = vsub.f32 %v2829_v50, %v2852_v57 }
   0xf   :  { %504 = vmatpush.msra.mxu2 %v2679_v11  ;;  %38 = vst.msk [vmem:[#allocation2 + $0x1] sm:$0x1] %vm33_vm0, %v37_v24  ;;  %v41_v26 = vld [vmem:[%s40_s18] sm:$0x1]  ;;  %s44_s22 = scalar_lea.vmem %s3485_s1, %s2682_s5  ;;  %v431_v27 = vand.u32 4294901760, %v430_v20  ;;  %568 = vmatpush.msra.mxu3 %v2666_v7  ;;  %v779_v28 = vsub.f32 %v2695_v15, %v2716_v21  ;;  %v437_v29 = vand.u32 4294901760, %v436_v22 }
  0x10   :  { %42 = vst.msk [vmem:[#allocation2 + $0x2] sm:$0x1] %vm33_vm0, %v41_v26  ;;  %v45_v30 = vld [vmem:[%s44_s22] sm:$0x1]  ;;  %s48_s25 = scalar_lea.vmem %s3485_s1, %s2689_s6  ;;  %349 = vmatpush.msra.mxu0 %v2666_v7  ;;  %v443_v31 = vand.u32 4294901760, %v442_v23  ;;  %v449_v34 = vand.u32 4294901760, %v448_v25 }
  0x11   :  { %507 = vmatpush.msra.mxu2 %v2687_v13  ;;  %46 = vst.msk [vmem:[#allocation2 + $0x3] sm:$0x1] %vm33_vm0, %v45_v30  ;;  %v49_v32 = vld [vmem:[%s48_s25] sm:$0x1]  ;;  %s52_s27 = scalar_lea.vmem %s3485_s1, %s2692_s7  ;;  %432 = vmatpush.msra.mxu1 %v431_v27  ;;  %v2752_v33 = vand.u32 4294901760, %v779_v28  ;;  %s2525_s5 = sld [smem:[#allocation3 + $0x9]] }
  0x12   :  { %50 = vst.msk [vmem:[#allocation2 + $0x4] sm:$0x1] %vm33_vm0, %v49_v32  ;;  %v53_v35 = vld [vmem:[%s52_s27] sm:$0x1]  ;;  %s56_s30 = scalar_lea.vmem %s3485_s1, %s2703_s11  ;;  %633 = vmatpush.msrb.mxu0 %v429_v14  ;;  %s2526_s9 = sld [smem:[#allocation3 + $0x11]]  ;;  %v2868_v62 = vand.u32 4294901760, %v785_v59 }
  0x13   :  { %748 = vmatpush.msrb.mxu2 %v2684_v12  ;;  %54 = vst.msk [vmem:[#allocation2 + $0x5] sm:$0x1] %vm33_vm0, %v53_v35  ;;  %v57_v36 = vld [vmem:[%s56_s30] sm:$0x1]  ;;  %s60_s8 = scalar_lea.vmem %s3485_s1, %s2713_s15  ;;  %781 = vmatpush.msrb.mxu3 %v2752_v33  ;;  %s2527_s13 = sld [smem:[#allocation3 + $0x19]]  ;;  %v2921_v13 = vand.u32 4294901760, %v293_v10 }
  0x14   :  { %438 = vmatpush.msra.mxu1 %v437_v29  ;;  %58 = vst.msk [vmem:[#allocation2 + $0x6] sm:$0x1] %vm33_vm0, %v57_v36  ;;  %v61_v37 = vld [vmem:[%s60_s8] sm:$0x1]  ;;  %s64_s12 = scalar_lea.vmem %s3485_s1, %s2729_s19  ;;  %637 = vmatpush.msrb.mxu0 %v435_v16  ;;  %s2528_s14 = sld [smem:[#allocation3 + $0x21]] }
  0x15   :  { %62 = vst.msk [vmem:[#allocation2 + $0x7] sm:$0x1] %vm33_vm0, %v61_v37  ;;  %v65_v38 = vld [vmem:[%s64_s12] sm:$0x1]  ;;  %s2773_s15 = sld [smem:[#allocation3 + $0x29]]  ;;  %750 = vmatpush.msrb.mxu2 %v2811_v45  ;;  %787 = vmatpush.msrb.mxu3 %v2868_v62 }
  0x16   :  { %444 = vmatpush.msra.mxu1 %v443_v31  ;;  %66 = vst.msk [vmem:[#allocation2 + $0x8] sm:$0x1] %vm33_vm0, %v65_v38  ;;  %641 = vmatpush.msrb.mxu0 %v441_v17  ;;  %s2775_s16 = sld [smem:[#allocation3 + $0x31]] }
  0x17   :  { %s68_s20 = scalar_lea.vmem %s3485_s1, %s2525_s5  ;;  %s2780_s19 = sld [smem:[#allocation3 + $0x39]]  ;;  %752 = vmatpush.msrb.mxu2 %v2921_v13 }
  0x18   :  { %450 = vmatpush.msra.mxu1 %v449_v34  ;;  %645 = vmatpush.msrb.mxu0 %v447_v18  ;;  %v69_v39 = vld [vmem:[%s68_s20] sm:$0x1]  ;;  %s72_s23 = scalar_lea.vmem %s3485_s1, %s2526_s9  ;;  %s2788_s24 = sld [smem:[#allocation3 + $0x2]]  ;;  %v2936_v18 = vsub.f32 %v293_v10, %v2921_v13 }
  0x19   :  { %70 = vst.msk [vmem:[#allocation2 + $0x9] sm:$0x1] %vm33_vm0, %v69_v39  ;;  %v73_v41 = vld [vmem:[%s72_s23] sm:$0x1]  ;;  %s76_s28 = scalar_lea.vmem %s3485_s1, %s2527_s13  ;;  %s2797_s29 = sld [smem:[#allocation3 + $0xa]] }
  0x1a   :  { %692 = vmatpush.msrb.mxu1 %v2655_v3  ;;  %74 = vst.msk [vmem:[#allocation2 + $0xa] sm:$0x1] %vm33_vm0, %v73_v41  ;;  %v77_v42 = vld [vmem:[%s76_s28] sm:$0x1]  ;;  %s80_s6 = scalar_lea.vmem %s3485_s1, %s2528_s14  ;;  %s2804_s7 = sld [smem:[#allocation3 + $0x12]]  ;;  %v2948_v23 = vand.u32 4294901760, %v2936_v18 }
  0x1b   :  { %78 = vst.msk [vmem:[#allocation2 + $0xb] sm:$0x1] %vm33_vm0, %v77_v42  ;;  %v81_v44 = vld [vmem:[%s80_s6] sm:$0x1]  ;;  %s84_s10 = scalar_lea.vmem %s3485_s1, %s2773_s15  ;;  %s2535_s21 = sld [smem:[#allocation3 + $0x1a]] }
  0x1c   :  { %694 = vmatpush.msrb.mxu1 %v2657_v4  ;;  %v296_v43 = vld [vmem:[#allocation2] sm:$0xff]  ;;  %82 = vst.msk [vmem:[#allocation2 + $0xc] sm:$0x1] %vm33_vm0, %v81_v44  ;;  %s88_s13 = scalar_lea.vmem %s3485_s1, %s2775_s16  ;;  %s2536_s25 = sld [smem:[#allocation3 + $0x22]]  ;;  %v791_v27 = vsub.f32 %v2936_v18, %v2948_v23 }
  0x1d   :  { %v307_v46 = vsel %vm305_vm1, %v296_v43, 0  ;;  %v85_v47 = vld [vmem:[%s84_s10] sm:$0x1]  ;;  %s92_s17 = scalar_lea.vmem %s3485_s1, %s2780_s19  ;;  %s2537_s27 = sld [smem:[#allocation3 + $0x2a]] }
  0x1e   :  { %696 = vmatpush.msrb.mxu1 %v2659_v5  ;;  %v2820_v48 = vand.u32 4294901760, %v307_v46  ;;  %86 = vst.msk [vmem:[#allocation2 + $0xd] sm:$0x1] %vm33_vm0, %v85_v47  ;;  %v89_v49 = vld [vmem:[%s88_s13] sm:$0x1]  ;;  %s96_s20 = scalar_lea.vmem %s3485_s1, %s2788_s24  ;;  %s2538_s28 = sld [smem:[#allocation3 + $0x32]] }
  0x1f   :  { %90 = vst.msk [vmem:[#allocation2 + $0xe] sm:$0x1] %vm33_vm0, %v89_v49  ;;  %v93_v51 = vld [vmem:[%s92_s17] sm:$0x1]  ;;  %s100_s23 = scalar_lea.vmem %s3485_s1, %s2797_s29  ;;  %s2856_s29 = sld [smem:[#allocation3 + $0x3a]]  ;;  %v2986_v31 = vand.u32 4294901760, %v791_v27 }
  0x20   :  { %698 = vmatpush.msrb.mxu1 %v2666_v7  ;;  %v351_v52 = vsub.f32 %v307_v46, %v2820_v48  ;;  %94 = vst.msk [vmem:[#allocation2 + $0xf] sm:$0x1] %vm33_vm0, %v93_v51  ;;  %v97_v53 = vld [vmem:[%s96_s20] sm:$0x1]  ;;  %s104_s24 = scalar_lea.vmem %s3485_s1, %s2804_s7  ;;  %s2863_s7 = sld [smem:[#allocation3 + $0x3]] }
  0x21   :  { %452 = vmatmul.f32.vlgmr.msra.gmra.mxu1 %v2820_v48  ;;  %98 = vst.msk [vmem:[#allocation2 + $0x10] sm:$0x1] %vm33_vm0, %v97_v53  ;;  %v101_v54 = vld [vmem:[%s100_s23] sm:$0x1]  ;;  %s108_s6 = scalar_lea.vmem %s3485_s1, %s2535_s21  ;;  %s2870_s11 = sld [smem:[#allocation3 + $0xb]]  ;;  %793 = vmatpush.msrb.mxu3 %v2986_v31 }
  0x22   :  { %1288 = vmatpush.msra.mxu1 %v2684_v12  ;;  %510 = vmatmul.f32.vlgmr.msra.gmra.mxu2 %v351_v52  ;;  %v352_v55 = vand.u32 4294901760, %v351_v52  ;;  %102 = vst.msk [vmem:[#allocation2 + $0x11] sm:$0x1] %vm33_vm0, %v101_v54  ;;  %v105_v56 = vld [vmem:[%s104_s24] sm:$0x1]  ;;  %s112_s10 = scalar_lea.vmem %s3485_s1, %s2536_s25  ;;  %s2542_s18 = sld [smem:[#allocation3 + $0x13]] }
  0x23   :  { %106 = vst.msk [vmem:[#allocation2 + $0x12] sm:$0x1] %vm33_vm0, %v105_v56  ;;  %v109_v61 = vld [vmem:[%s108_s6] sm:$0x1]  ;;  %s116_s14 = scalar_lea.vmem %s3485_s1, %s2537_s27  ;;  %s2890_s22 = sld [smem:[#allocation3 + $0x1b]]  ;;  %v292_v54 = vld [vmem:[%s3486_s2 + $0x21] sm:$0xff] }
  0x24   :  { %1290 = vmatpush.msra.mxu1 %v2811_v45  ;;  %572 = vmatmul.f32.vlgmr.msra.gmra.mxu3 %v352_v55  ;;  %v353_v58 = vsub.f32 %v351_v52, %v352_v55  ;;  %110 = vst.msk [vmem:[#allocation2 + $0x13] sm:$0x1] %vm33_vm0, %v109_v61  ;;  %v113_v0 = vld [vmem:[%s112_s10] sm:$0x1]  ;;  %s120_s16 = scalar_lea.vmem %s3485_s1, %s2538_s28  ;;  %s2899_s26 = sld [smem:[#allocation3 + $0x23]]  ;;  %v3055_v56 = vand.u32 4294901760, %v292_v54 }
  0x25   :  { %114 = vst.msk [vmem:[#allocation2 + $0x14] sm:$0x1] %vm33_vm0, %v113_v0  ;;  %v117_v2 = vld [vmem:[%s116_s14] sm:$0x1]  ;;  %s124_s19 = scalar_lea.vmem %s3485_s1, %s2856_s29  ;;  %s2907_s29 = sld [smem:[#allocation3 + $0x2b]] }
  0x26   :  { %v354_v60 = vand.u32 4294901760, %v353_v58  ;;  %118 = vst.msk [vmem:[#allocation2 + $0x15] sm:$0x1] %vm33_vm0, %v117_v2  ;;  %v121_v4 = vld [vmem:[%s120_s16] sm:$0x1]  ;;  %s128_s0 = scalar_lea.vmem %s3485_s1, %s2863_s7  ;;  %s2911_s30 = sld [smem:[#allocation3 + $0x33]]  ;;  %1292 = vmatpush.msra.mxu1 %v2921_v13  ;;  %754 = vmatpush.msrb.mxu2 %v3055_v56  ;;  %v3069_v61 = vsub.f32 %v292_v54, %v3055_v56 }
  0x27   :  { %v297_v63 = vld [vmem:[#allocation2 + $0x8] sm:$0xff]  ;;  %122 = vst.msk [vmem:[#allocation2 + $0x16] sm:$0x1] %vm33_vm0, %v121_v4  ;;  %v125_v6 = vld [vmem:[%s124_s19] sm:$0x1]  ;;  %s132_s28 = scalar_lea.vmem %s3485_s1, %s2870_s11  ;;  %s2919_s10 = sld [smem:[#allocation3 + $0x3b]] }
  0x28   :  { %355 = vmatmul.f32.vlgmr.msra.gmra.mxu0 %v354_v60  ;;  %v310_v1 = vsel %vm305_vm1, %v297_v63, 0  ;;  %126 = vst.msk [vmem:[#allocation2 + $0x17] sm:$0x1] %vm33_vm0, %v125_v6  ;;  %v129_v7 = vld [vmem:[%s128_s0] sm:$0x1]  ;;  %s136_s9 = scalar_lea.vmem %s3485_s1, %s2542_s18  ;;  %s2927_s14 = sld [smem:[#allocation3 + $0x4]]  ;;  %1294 = vmatpush.msra.mxu1 %v3055_v56 }
  0x29   :  { %v2879_v3 = vand.u32 4294901760, %v310_v1  ;;  %1257 = vmatpush.msra.mxu0 %v2716_v21  ;;  %130 = vst.msk [vmem:[#allocation2 + $0x18] sm:$0x1] %vm33_vm0, %v129_v7  ;;  %v133_v9 = vld [vmem:[%s132_s28] sm:$0x1]  ;;  %s140_s13 = scalar_lea.vmem %s3485_s1, %s2890_s22  ;;  %s2944_s19 = sld [smem:[#allocation3 + $0xc]]  ;;  %819 = vmatpush.msra.mxu2 %v2695_v15 }
  0x2a   :  { %134 = vst.msk [vmem:[#allocation2 + $0x19] sm:$0x1] %vm33_vm0, %v133_v9  ;;  %v137_v14 = vld [vmem:[%s136_s9] sm:$0x1]  ;;  %s144_s16 = scalar_lea.vmem %s3485_s1, %s2899_s26  ;;  %s2956_s0 = sld [smem:[#allocation3 + $0x14]]  ;;  %v3087_v4 = vand.u32 4294901760, %v3069_v61 }
  0x2b   :  { %v359_v5 = vsub.f32 %v310_v1, %v2879_v3  ;;  %456 = vmatmul.f32.gmra.mxu1 %v2879_v3  ;;  %1261 = vmatpush.msra.mxu0 %v2852_v57  ;;  %138 = vst.msk [vmem:[#allocation2 + $0x1a] sm:$0x1] %vm33_vm0, %v137_v14  ;;  %v141_v17 = vld [vmem:[%s140_s13] sm:$0x1]  ;;  %s148_s21 = scalar_lea.vmem %s3485_s1, %s2907_s29  ;;  %s2964_s28 = sld [smem:[#allocation3 + $0x1c]] }
  0x2c   :  { %142 = vst.msk [vmem:[#allocation2 + $0x1b] sm:$0x1] %vm33_vm0, %v141_v17  ;;  %v145_v19 = vld [vmem:[%s144_s16] sm:$0x1]  ;;  %s152_s25 = scalar_lea.vmem %s3485_s1, %s2911_s30  ;;  %s2974_s6 = sld [smem:[#allocation3 + $0x24]]  ;;  %822 = vmatpush.msra.mxu2 %v2829_v50 }
  0x2d   :  { %515 = vmatmul.f32.gmra.mxu2 %v359_v5  ;;  %v360_v8 = vand.u32 4294901760, %v359_v5  ;;  %146 = vst.msk [vmem:[#allocation2 + $0x1c] sm:$0x1] %vm33_vm0, %v145_v19  ;;  %v149_v22 = vld [vmem:[%s148_s21] sm:$0x1]  ;;  %s156_s27 = scalar_lea.vmem %s3485_s1, %s2919_s10  ;;  %1265 = vmatpush.msra.mxu0 %v2948_v23  ;;  %s2553_s7 = sld [smem:[#allocation3 + $0x2c]] }
  0x2e   :  { %150 = vst.msk [vmem:[#allocation2 + $0x1d] sm:$0x1] %vm33_vm0, %v149_v22  ;;  %v153_v26 = vld [vmem:[%s152_s25] sm:$0x1]  ;;  %s160_s5 = scalar_lea.vmem %s3485_s1, %s2927_s14  ;;  %s2984_s11 = sld [smem:[#allocation3 + $0x34]]  ;;  %825 = vmatpush.msra.mxu2 %v2936_v18 }
  0x2f   :  { %578 = vmatmul.f32.gmra.mxu3 %v360_v8  ;;  %v361_v11 = vsub.f32 %v359_v5, %v360_v8  ;;  %v298_v20 = vld [vmem:[#allocation2 + $0x10] sm:$0xff]  ;;  %154 = vst.msk [vmem:[#allocation2 + $0x1e] sm:$0x1] %vm33_vm0, %v153_v26  ;;  %v157_v28 = vld [vmem:[%s156_s27] sm:$0x1]  ;;  %s164_s10 = scalar_lea.vmem %s3485_s1, %s2944_s19  ;;  %s2988_s12 = sld [smem:[#allocation3 + $0x3c]]  ;;  %v797_v8 = vsub.f32 %v3069_v61, %v3087_v4  ;;  %1269 = vmatpush.msra.mxu0 %v3087_v4 }
  0x30   :  { %v313_v24 = vsel %vm305_vm1, %v298_v20, 0  ;;  %158 = vst.msk [vmem:[#allocation2 + $0x1f] sm:$0x1] %vm33_vm0, %v157_v28  ;;  %v161_v30 = vld [vmem:[%s160_s5] sm:$0x1]  ;;  %s168_s15 = scalar_lea.vmem %s3485_s1, %s2956_s0  ;;  %s2556_s17 = sld [smem:[#allocation3 + $0x5]]  ;;  %828 = vmatpush.msra.mxu2 %v3069_v61 }
  0x31   :  { %v362_v16 = vand.u32 4294901760, %v361_v11  ;;  %v2958_v25 = vand.u32 4294901760, %v313_v24  ;;  %162 = vst.msk [vmem:[#allocation2 + $0x20] sm:$0x1] %vm33_vm0, %v161_v30  ;;  %v165_v34 = vld [vmem:[%s164_s10] sm:$0x1]  ;;  %s172_s20 = scalar_lea.vmem %s3485_s1, %s2964_s28 }
  0x32   :  { %166 = vst.msk [vmem:[#allocation2 + $0x21] sm:$0x1] %vm33_vm0, %v165_v34  ;;  %v169_v36 = vld [vmem:[%s168_s15] sm:$0x1]  ;;  %s3000_s21 = sld [smem:[#allocation3 + $0xd]]  ;;  %s176_s23 = scalar_lea.vmem %s3485_s1, %s2974_s6  ;;  %v3122_v14 = vand.u32 4294901760, %v797_v8 }
  0x33   :  { %363 = vmatmul.f32.gmra.mxu0 %v362_v16  ;;  %v367_v29 = vsub.f32 %v313_v24, %v2958_v25  ;;  %460 = vmatmul.f32.gmra.mxu1 %v2958_v25  ;;  %170 = vst.msk [vmem:[#allocation2 + $0x22] sm:$0x1] %vm33_vm0, %v169_v36  ;;  %v173_v37 = vld [vmem:[%s172_s20] sm:$0x1]  ;;  %s3007_s25 = sld [smem:[#allocation3 + $0x15]]  ;;  %s180_s24 = scalar_lea.vmem %s3485_s1, %s2553_s7 }
  0x34   :  { %174 = vst.msk [vmem:[#allocation2 + $0x23] sm:$0x1] %vm33_vm0, %v173_v37  ;;  %v177_v39 = vld [vmem:[%s176_s23] sm:$0x1]  ;;  %s184_s29 = scalar_lea.vmem %s3485_s1, %s2984_s11  ;;  %s2559_s14 = sld [smem:[#allocation3 + $0x1d]]  ;;  %799 = vmatpush.msrb.mxu3 %v3122_v14 }
  0x35   :  { %520 = vmatmul.f32.gmra.mxu2 %v367_v29  ;;  %v368_v32 = vand.u32 4294901760, %v367_v29  ;;  %178 = vst.msk [vmem:[#allocation2 + $0x24] sm:$0x1] %vm33_vm0, %v177_v39  ;;  %v181_v41 = vld [vmem:[%s180_s24] sm:$0x1]  ;;  %s188_s6 = scalar_lea.vmem %s3485_s1, %s2988_s12  ;;  %s3043_s18 = sld [smem:[#allocation3 + $0x2d]] }
  0x36   :  { %182 = vst.msk [vmem:[#allocation2 + $0x25] sm:$0x1] %vm33_vm0, %v181_v41  ;;  %v185_v43 = vld [vmem:[%s184_s29] sm:$0x1]  ;;  %s192_s9 = scalar_lea.vmem %s3485_s1, %s2556_s17  ;;  %s2560_s17 = sld [smem:[#allocation3 + $0x25]]  ;;  %848 = vmatpush.msra.mxu3 %v2684_v12 }
  0x37   :  { %584 = vmatmul.f32.gmra.mxu3 %v368_v32  ;;  %v369_v35 = vsub.f32 %v367_v29, %v368_v32  ;;  %v299_v40 = vld [vmem:[#allocation2 + $0x18] sm:$0xff]  ;;  %186 = vst.msk [vmem:[#allocation2 + $0x26] sm:$0x1] %vm33_vm0, %v185_v43  ;;  %v189_v46 = vld [vmem:[%s188_s6] sm:$0x1]  ;;  %s3046_s20 = sld [smem:[#allocation3 + $0x35]] }
  0x38   :  { %v316_v42 = vsel %vm305_vm1, %v299_v40, 0  ;;  %190 = vst.msk [vmem:[#allocation2 + $0x27] sm:$0x1] %vm33_vm0, %v189_v46  ;;  %v193_v47 = vld [vmem:[%s192_s9] sm:$0x1]  ;;  %s196_s13 = scalar_lea.vmem %s3485_s1, %s3000_s21  ;;  %s3048_s21 = sld [smem:[#allocation3 + $0x3d]]  ;;  %850 = vmatpush.msra.mxu3 %v2811_v45 }
  0x39   :  { %v370_v38 = vand.u32 4294901760, %v369_v35  ;;  %v3024_v44 = vand.u32 4294901760, %v316_v42  ;;  %194 = vst.msk [vmem:[#allocation2 + $0x28] sm:$0x1] %vm33_vm0, %v193_v47  ;;  %v197_v51 = vld [vmem:[%s196_s13] sm:$0x1]  ;;  %s200_s16 = scalar_lea.vmem %s3485_s1, %s3007_s25 }
  0x3a   :  { %198 = vst.msk [vmem:[#allocation2 + $0x29] sm:$0x1] %vm33_vm0, %v197_v51  ;;  %v201_v52 = vld [vmem:[%s200_s16] sm:$0x1]  ;;  %s3053_s23 = sld [smem:[#allocation3 + $0x6]]  ;;  %s204_s26 = scalar_lea.vmem %s3485_s1, %s2559_s14  ;;  %852 = vmatpush.msra.mxu3 %v2921_v13 }
  0x3b   :  { %371 = vmatmul.f32.gmra.mxu0 %v370_v38  ;;  %v375_v49 = vsub.f32 %v316_v42, %v3024_v44  ;;  %464 = vmatmul.f32.gmra.mxu1 %v3024_v44  ;;  %202 = vst.msk [vmem:[#allocation2 + $0x2a] sm:$0x1] %vm33_vm0, %v201_v52  ;;  %s3060_s24 = sld [smem:[#allocation3 + $0xe]]  ;;  %v205_v60 = vld [vmem:[%s204_s26] sm:$0x1]  ;;  %s212_s7 = scalar_lea.vmem %s3485_s1, %s3043_s18 }
  0x3c   :  { %s208_s29 = scalar_lea.vmem %s3485_s1, %s2560_s17  ;;  %s3065_s30 = sld [smem:[#allocation3 + $0x16]]  ;;  %206 = vst.msk [vmem:[#allocation2 + $0x2b] sm:$0x1] %vm33_vm0, %v205_v60  ;;  %v213_v2 = vld [vmem:[%s212_s7] sm:$0x1]  ;;  %854 = vmatpush.msra.mxu3 %v3055_v56 }
  0x3d   :  { %525 = vmatmul.f32.gmra.mxu2 %v375_v49  ;;  %v376_v53 = vand.u32 4294901760, %v375_v49  ;;  %v209_v0 = vld [vmem:[%s208_s29] sm:$0x1]  ;;  %s216_s10 = scalar_lea.vmem %s3485_s1, %s3046_s20  ;;  %214 = vst.msk [vmem:[#allocation2 + $0x2d] sm:$0x1] %vm33_vm0, %v213_v2  ;;  %s3094_s12 = sld [smem:[#allocation3 + $0x1e]] }
  0x3e   :  { %210 = vst.msk [vmem:[#allocation2 + $0x2c] sm:$0x1] %vm33_vm0, %v209_v0  ;;  %v217_v5 = vld [vmem:[%s216_s10] sm:$0x1]  ;;  %s220_s14 = scalar_lea.vmem %s3485_s1, %s3048_s21  ;;  %s3104_s18 = sld [smem:[#allocation3 + $0x26]] }
  0x3f   :  { %590 = vmatmul.f32.gmra.mxu3 %v376_v53  ;;  %v377_v55 = vsub.f32 %v375_v49, %v376_v53  ;;  %v300_v59 = vld [vmem:[#allocation2 + $0x20] sm:$0xff]  ;;  %218 = vst.msk [vmem:[#allocation2 + $0x2e] sm:$0x1] %vm33_vm0, %v217_v5  ;;  %s3114_s22 = sld [smem:[#allocation3 + $0x2e]] }
  0x40   :  { %v319_v63 = vsel %vm305_vm1, %v300_v59, 0  ;;  %v221_v7 = vld [vmem:[%s220_s14] sm:$0x1]  ;;  %s224_s17 = scalar_lea.vmem %s3485_s1, %s3053_s23  ;;  %s2570_s26 = sld [smem:[#allocation3 + $0x36]] }
  0x41   :  { %v378_v58 = vand.u32 4294901760, %v377_v55  ;;  %v3079_v1 = vand.u32 4294901760, %v319_v63  ;;  %222 = vst.msk [vmem:[#allocation2 + $0x2f] sm:$0x1] %vm33_vm0, %v221_v7  ;;  %v225_v9 = vld [vmem:[%s224_s17] sm:$0x1]  ;;  %s228_s19 = scalar_lea.vmem %s3485_s1, %s3060_s24 }
  0x42   :  { %226 = vst.msk [vmem:[#allocation2 + $0x30] sm:$0x1] %vm33_vm0, %v225_v9  ;;  %v229_v11 = vld [vmem:[%s228_s19] sm:$0x1]  ;;  %s232_s0 = scalar_lea.vmem %s3485_s1, %s3065_s30  ;;  %s2571_s24 = sld [smem:[#allocation3 + $0x3e]] }
  0x43   :  { %379 = vmatmul.f32.gmra.mxu0 %v378_v58  ;;  %v383_v6 = vsub.f32 %v319_v63, %v3079_v1  ;;  %468 = vmatmul.f32.gmra.mxu1 %v3079_v1  ;;  %230 = vst.msk [vmem:[#allocation2 + $0x31] sm:$0x1] %vm33_vm0, %v229_v11  ;;  %v233_v16 = vld [vmem:[%s232_s0] sm:$0x1]  ;;  %s236_s29 = scalar_lea.vmem %s3485_s1, %s3094_s12  ;;  %s3132_s30 = sld [smem:[#allocation3 + $0x7]] }
  0x44   :  { %234 = vst.msk [vmem:[#allocation2 + $0x32] sm:$0x1] %vm33_vm0, %v233_v16  ;;  %v237_v20 = vld [vmem:[%s236_s29] sm:$0x1]  ;;  %s240_s7 = scalar_lea.vmem %s3485_s1, %s3104_s18  ;;  %s3138_s8 = sld [smem:[#allocation3 + $0xf]] }
  0x45   :  { %530 = vmatmul.f32.gmra.mxu2 %v383_v6  ;;  %v384_v10 = vand.u32 4294901760, %v383_v6  ;;  %238 = vst.msk [vmem:[#allocation2 + $0x33] sm:$0x1] %vm33_vm0, %v237_v20  ;;  %v241_v22 = vld [vmem:[%s240_s7] sm:$0x1]  ;;  %s244_s11 = scalar_lea.vmem %s3485_s1, %s3114_s22  ;;  %s3146_s13 = sld [smem:[#allocation3 + $0x17]] }
  0x46   :  { %242 = vst.msk [vmem:[#allocation2 + $0x34] sm:$0x1] %vm33_vm0, %v241_v22  ;;  %v245_v26 = vld [vmem:[%s244_s11] sm:$0x1]  ;;  %s248_s15 = scalar_lea.vmem %s3485_s1, %s2570_s26  ;;  %s3155_s16 = sld [smem:[#allocation3 + $0x1f]] }
  0x47   :  { %596 = vmatmul.f32.gmra.mxu3 %v384_v10  ;;  %v385_v17 = vsub.f32 %v383_v6, %v384_v10  ;;  %246 = vst.msk [vmem:[#allocation2 + $0x35] sm:$0x1] %vm33_vm0, %v245_v26  ;;  %v249_v29 = vld [vmem:[%s248_s15] sm:$0x1]  ;;  %s2576_s21 = sld [smem:[#allocation3 + $0x27]]  ;;  %v2615_v6 = vmov 0.0  }
  0x48   :  { %v301_v24 = vld [vmem:[#allocation2 + $0x28] sm:$0xff]  ;;  %s252_s20 = scalar_lea.vmem %s3485_s1, %s2571_s24  ;;  %250 = vst.msk [vmem:[#allocation2 + $0x36] sm:$0x1] %vm33_vm0, %v249_v29  ;;  %s2577_s25 = sld [smem:[#allocation3 + $0x2f]] }
  0x49   :  { %v386_v19 = vand.u32 4294901760, %v385_v17  ;;  %v322_v27 = vsel %vm305_vm1, %v301_v24, 0  ;;  %v253_v30 = vld [vmem:[%s252_s20] sm:$0x1]  ;;  %s256_s23 = scalar_lea.vmem %s3485_s1, %s3132_s30  ;;  %s2578_s27 = sld [smem:[#allocation3 + $0x37]] }
  0x4a   :  { %v3157_v28 = vand.u32 4294901760, %v322_v27  ;;  %254 = vst.msk [vmem:[#allocation2 + $0x37] sm:$0x1] %vm33_vm0, %v253_v30  ;;  %v257_v34 = vld [vmem:[%s256_s23] sm:$0x1]  ;;  %s260_s24 = scalar_lea.vmem %s3485_s1, %s3138_s8  ;;  %s2579_s5 = sld [smem:[#allocation3 + $0x3f]] }
  0x4b   :  { %387 = vmatmul.f32.gmra.mxu0 %v386_v19  ;;  %258 = vst.msk [vmem:[#allocation2 + $0x38] sm:$0x1] %vm33_vm0, %v257_v34  ;;  %v261_v35 = vld [vmem:[%s260_s24] sm:$0x1]  ;;  %s264_s30 = scalar_lea.vmem %s3485_s1, %s3146_s13 }
  0x4c   :  { %v391_v32 = vsub.f32 %v322_v27, %v3157_v28  ;;  %472 = vmatmul.f32.gmra.mxu1 %v3157_v28  ;;  %262 = vst.msk [vmem:[#allocation2 + $0x39] sm:$0x1] %vm33_vm0, %v261_v35  ;;  %v265_v37 = vld [vmem:[%s264_s30] sm:$0x1]  ;;  %s268_s8 = scalar_lea.vmem %s3485_s1, %s3155_s16 }
  0x4d   :  { %266 = vst.msk [vmem:[#allocation2 + $0x3a] sm:$0x1] %vm33_vm0, %v265_v37  ;;  %v269_v39 = vld [vmem:[%s268_s8] sm:$0x1]  ;;  %s272_s11 = scalar_lea.vmem %s3485_s1, %s2576_s21 }
  0x4e   :  { %535 = vmatmul.f32.gmra.mxu2 %v391_v32  ;;  %v392_v36 = vand.u32 4294901760, %v391_v32  ;;  %270 = vst.msk [vmem:[#allocation2 + $0x3b] sm:$0x1] %vm33_vm0, %v269_v39  ;;  %v273_v40 = vld [vmem:[%s272_s11] sm:$0x1]  ;;  %s276_s12 = scalar_lea.vmem %s3485_s1, %s2577_s25 }
  0x4f   :  { %274 = vst.msk [vmem:[#allocation2 + $0x3c] sm:$0x1] %vm33_vm0, %v273_v40  ;;  %v277_v42 = vld [vmem:[%s276_s12] sm:$0x1]  ;;  %s280_s17 = scalar_lea.vmem %s3485_s1, %s2578_s27 }
  0x50   :  { %602 = vmatmul.f32.gmra.mxu3 %v392_v36  ;;  %v393_v38 = vsub.f32 %v391_v32, %v392_v36  ;;  %278 = vst.msk [vmem:[#allocation2 + $0x3d] sm:$0x1] %vm33_vm0, %v277_v42  ;;  %v281_v46 = vld [vmem:[%s280_s17] sm:$0x1]  ;;  %s284_s21 = scalar_lea.vmem %s3485_s1, %s2579_s5 }
  0x51   :  { %v302_v43 = vld [vmem:[#allocation2 + $0x30] sm:$0xff]  ;;  %282 = vst.msk [vmem:[#allocation2 + $0x3e] sm:$0x1] %vm33_vm0, %v281_v46  ;;  %v285_v49 = vld [vmem:[%s284_s21] sm:$0x1] }
  0x52   :  { %v394_v41 = vand.u32 4294901760, %v393_v38  ;;  %v325_v47 = vsel %vm305_vm1, %v302_v43, 0  ;;  %286 = vst.msk [vmem:[#allocation2 + $0x3f] sm:$0x1] %vm33_vm0, %v285_v49 }
  0x53   :  { %v3204_v51 = vand.u32 4294901760, %v325_v47 }
  0x54   :  { %395 = vmatmul.f32.gmra.mxu0 %v394_v41 }
  0x55   :  { %v399_v52 = vsub.f32 %v325_v47, %v3204_v51  ;;  %476 = vmatmul.f32.gmra.mxu1 %v3204_v51 }
  0x57   :  { %540 = vmatmul.f32.gmra.mxu2 %v399_v52  ;;  %v400_v53 = vand.u32 4294901760, %v399_v52 }
  0x59   :  { %608 = vmatmul.f32.gmra.mxu3 %v400_v53  ;;  %v401_v54 = vsub.f32 %v399_v52, %v400_v53  ;;  %v303_v55 = vld [vmem:[#allocation2 + $0x38] sm:$0xff] }
  0x5a   :  { %v328_v59 = vsel %vm305_vm1, %v303_v55, 0 }
  0x5b   :  { %v402_v58 = vand.u32 4294901760, %v401_v54  ;;  %v3210_v60 = vand.u32 4294901760, %v328_v59 }
  0x5d   :  { %403 = vmatmul.f32.gmra.mxu0 %v402_v58  ;;  %v407_v63 = vsub.f32 %v328_v59, %v3210_v60  ;;  %480 = vmatmul.f32.gmra.mxu1 %v3210_v60 }
  0x5f   :  { %545 = vmatmul.f32.gmra.mxu2 %v407_v63  ;;  %v408_v0 = vand.u32 4294901760, %v407_v63 }
  0x61   :  { %614 = vmatmul.f32.gmra.mxu3 %v408_v0  ;;  %v409_v2 = vsub.f32 %v407_v63, %v408_v0 }
  0x63   :  { %v410_v5 = vand.u32 4294901760, %v409_v2 }
  0x65   :  { %411 = vmatmul.f32.gmra.mxu0 %v410_v5  ;;  %700 = vmatmul.f32.vlgmr.msrb.gmra.mxu1 %v2820_v48 }
  0x66   :  { %1418 = vmatpush.msrb.mxu1 %v2684_v12 }
  0x67   :  { %760 = vmatmul.f32.vlgmr.msrb.gmra.mxu2 %v2615_v6 }
  0x68   :  { %877 = vmatpush.msrb.mxu2 %v2716_v21  ;;  %1420 = vmatpush.msrb.mxu1 %v2811_v45 }
  0x69   :  { %801 = vmatmul.f32.vlgmr.msrb.gmra.mxu3 %v2615_v6 }
  0x6a   :  { %881 = vmatpush.msrb.mxu2 %v2852_v57  ;;  %908 = vmatpush.msrb.mxu3 %v2684_v12 }
  0x6b   :  { %1422 = vmatpush.msrb.mxu1 %v2921_v13 }
  0x6c   :  { %885 = vmatpush.msrb.mxu2 %v2948_v23  ;;  %910 = vmatpush.msrb.mxu3 %v2811_v45 }
  0x6d   :  { %647 = vmatmul.f32.vlgmr.msrb.gmra.mxu0 %v2820_v48  ;;  %704 = vmatmul.f32.gmra.mxu1 %v2879_v3 }
  0x6e   :  { %889 = vmatpush.msrb.mxu2 %v3087_v4  ;;  %912 = vmatpush.msrb.mxu3 %v2921_v13 }
  0x6f   :  { %831 = vmatmul.f32.vlgmr.msra.gmra.mxu2 %v2615_v6  ;;  %1389 = vmatpush.msrb.mxu0 %v2695_v15 }
  0x70   :  { %914 = vmatpush.msrb.mxu3 %v3055_v56  ;;  %938 = vmatpush.msra.mxu2 %v2684_v12 }
  0x71   :  { %858 = vmatmul.f32.vlgmr.msra.gmra.mxu3 %v2615_v6  ;;  %1392 = vmatpush.msrb.mxu0 %v2829_v50 }
  0x72   :  { %971 = vmatpush.msra.mxu3 %v2752_v33  ;;  %940 = vmatpush.msra.mxu2 %v2811_v45 }
  0x73   :  { %1395 = vmatpush.msrb.mxu0 %v2936_v18  ;;  %1424 = vmatpush.msrb.mxu1 %v3055_v56 }
  0x74   :  { %977 = vmatpush.msra.mxu3 %v2868_v62  ;;  %942 = vmatpush.msra.mxu2 %v2921_v13 }
  0x75   :  { %651 = vmatmul.f32.gmra.mxu0 %v2879_v3  ;;  %708 = vmatmul.f32.gmra.mxu1 %v2958_v25 }
  0x76   :  { %983 = vmatpush.msra.mxu3 %v2986_v31  ;;  %944 = vmatpush.msra.mxu2 %v3055_v56 }
  0x77   :  { %891 = vmatmul.f32.vlgmr.msrb.gmra.mxu2 %v2615_v6  ;;  %1398 = vmatpush.msrb.mxu0 %v3069_v61 }
  0x78   :  { %989 = vmatpush.msra.mxu3 %v3122_v14  ;;  %1009 = vmatpush.msrb.mxu2 %v2695_v15 }
  0x79   :  { %916 = vmatmul.f32.vlgmr.msrb.gmra.mxu3 %v2615_v6 }
  0x7a   :  { %1038 = vmatpush.msrb.mxu3 %v2684_v12  ;;  %1012 = vmatpush.msrb.mxu2 %v2829_v50 }
  0x7c   :  { %1040 = vmatpush.msrb.mxu3 %v2811_v45  ;;  %1015 = vmatpush.msrb.mxu2 %v2936_v18 }
  0x7d   :  { %655 = vmatmul.f32.gmra.mxu0 %v2958_v25  ;;  %712 = vmatmul.f32.gmra.mxu1 %v3024_v44 }
  0x7e   :  { %1042 = vmatpush.msrb.mxu3 %v2921_v13  ;;  %1018 = vmatpush.msrb.mxu2 %v3069_v61 }
  0x80   :  { %1044 = vmatpush.msrb.mxu3 %v3055_v56 }
  0x85   :  { %659 = vmatmul.f32.gmra.mxu0 %v3024_v44  ;;  %716 = vmatmul.f32.gmra.mxu1 %v3079_v1 }
  0x8d   :  { %663 = vmatmul.f32.gmra.mxu0 %v3079_v1  ;;  %720 = vmatmul.f32.gmra.mxu1 %v3157_v28  ;;  %v2582_v1 = vld [vmem:[%s3486_s2 + $0x20] ss:$0 sm:$0xff] }
  0x95   :  { %667 = vmatmul.f32.gmra.mxu0 %v3157_v28  ;;  %724 = vmatmul.f32.gmra.mxu1 %v3204_v51 }
  0x9d   :  { %671 = vmatmul.f32.gmra.mxu0 %v3204_v51  ;;  %728 = vmatmul.f32.gmra.mxu1 %v3210_v60 }
  0x9e   :  { %v3259_v48 = vpop.f32.mrf.mxu1 }
  0xa5   :  { %v3261_v3 = vpop.f32.mrf.mxu0  ;;  %v3263_v25 = vpop.f32.mrf.mxu2  ;;  %675 = vmatmul.f32.gmra.mxu0 %v3210_v60 }
  0xa7   :  { %v3267_v44 = vpop.f32.mrf.mxu3 }
  0xa8   :  { %v457_v7 = vpop.f32.mrf.mxu1 }
  0xb0   :  { %v364_v8 = vpop.f32.mrf.mxu0  ;;  %v516_v11 = vpop.f32.mrf.mxu2 }
  0xb1   :  { %v365_v9 = vadd.f32 %v2582_v1, %v364_v8  ;;  %v461_v20 = vpop.f32.mrf.mxu1 }
  0xb2   :  { %v579_v17 = vpop.f32.mrf.mxu3 }
  0xb3   :  { %v458_v10 = vadd.f32 %v457_v7, %v365_v9 }
  0xb5   :  { %v517_v16 = vadd.f32 %v516_v11, %v458_v10 }
  0xb7   :  { %v3273_v19 = vadd.f32 %v579_v17, %v517_v16 }
  0xb8   :  { %v372_v22 = vpop.f32.mrf.mxu0  ;;  %v521_v27 = vpop.f32.mrf.mxu2 }
  0xb9   :  { %v373_v24 = vadd.f32 %v2582_v1, %v372_v22  ;;  %v465_v30 = vpop.f32.mrf.mxu1 }
  0xba   :  { %v585_v29 = vpop.f32.mrf.mxu3 }
  0xbb   :  { %v462_v26 = vadd.f32 %v461_v20, %v373_v24 }
  0xbd   :  { %v522_v28 = vadd.f32 %v521_v27, %v462_v26 }
  0xbf   :  { %v3275_v32 = vadd.f32 %v585_v29, %v522_v28 }
  0xc0   :  { %v380_v34 = vpop.f32.mrf.mxu0  ;;  %v526_v36 = vpop.f32.mrf.mxu2 }
  0xc1   :  { %v381_v35 = vadd.f32 %v2582_v1, %v380_v34  ;;  %v469_v40 = vpop.f32.mrf.mxu1 }
  0xc2   :  { %v591_v39 = vpop.f32.mrf.mxu3 }
  0xc3   :  { %v466_v37 = vadd.f32 %v465_v30, %v381_v35  ;;  %v357_v35 = vadd.f32 %v2582_v1, %v3261_v3 }
  0xc5   :  { %v527_v38 = vadd.f32 %v526_v36, %v466_v37 }
  0xc7   :  { %v592_v41 = vadd.f32 %v591_v39, %v527_v38  ;;  %v454_v38 = vadd.f32 %v3259_v48, %v357_v35 }
  0xc8   :  { %v388_v42 = vpop.f32.mrf.mxu0  ;;  %v531_v46 = vpop.f32.mrf.mxu2 }
  0xc9   :  { %v389_v43 = vadd.f32 %v2582_v1, %v388_v42  ;;  %v473_v52 = vpop.f32.mrf.mxu1  ;;  %v512_v42 = vadd.f32 %v3263_v25, %v454_v38 }
  0xca   :  { %v597_v51 = vpop.f32.mrf.mxu3 }
  0xcb   :  { %v470_v47 = vadd.f32 %v469_v40, %v389_v43 }
  0xcd   :  { %v532_v49 = vadd.f32 %v531_v46, %v470_v47 }
  0xcf   :  { %v598_v53 = vadd.f32 %v597_v51, %v532_v49  ;;  %v574_v51 = vadd.f32 %v3267_v44, %v512_v42 }
  0xd1   :  { %v396_v54 = vpop.f32.mrf.mxu0  ;;  %v536_v58 = vpop.f32.mrf.mxu2 }
  0xd2   :  { %v397_v55 = vadd.f32 %v2582_v1, %v396_v54  ;;  %v477_v63 = vpop.f32.mrf.mxu1 }
  0xd3   :  { %v603_v60 = vpop.f32.mrf.mxu3 }
  0xd4   :  { %v474_v59 = vadd.f32 %v473_v52, %v397_v55 }
  0xd6   :  { %v537_v0 = vadd.f32 %v536_v58, %v474_v59 }
  0xd8   :  { %v3277_v2 = vadd.f32 %v603_v60, %v537_v0 }
  0xda   :  { %v404_v5 = vpop.f32.mrf.mxu0  ;;  %v541_v6 = vpop.f32.mrf.mxu2 }
  0xdb   :  { %v405_v7 = vadd.f32 %v2582_v1, %v404_v5  ;;  %v481_v8 = vpop.f32.mrf.mxu1 }
  0xdc   :  { %v609_v9 = vpop.f32.mrf.mxu3 }
  0xdd   :  { %v478_v10 = vadd.f32 %v477_v63, %v405_v7 }
  0xdf   :  { %v542_v11 = vadd.f32 %v541_v6, %v478_v10 }
  0xe1   :  { %v3279_v16 = vadd.f32 %v609_v9, %v542_v11 }
  0xe2   :  { %v412_v17 = vpop.f32.mrf.mxu0  ;;  %v546_v20 = vpop.f32.mrf.mxu2 }
  0xe3   :  { %v413_v22 = vadd.f32 %v2582_v1, %v412_v17  ;;  %v701_v24 = vpop.f32.mrf.mxu1 }
  0xe4   :  { %v615_v26 = vpop.f32.mrf.mxu3 }
  0xe5   :  { %v482_v27 = vadd.f32 %v481_v8, %v413_v22 }
  0xe7   :  { %v547_v28 = vadd.f32 %v546_v20, %v482_v27 }
  0xe9   :  { %v3281_v29 = vadd.f32 %v615_v26, %v547_v28 }
  0xea   :  { %v648_v30 = vpop.f32.mrf.mxu0  ;;  %v761_v34 = vpop.f32.mrf.mxu2 }
  0xeb   :  { %v3284_v36 = vpop.f32.mrf.mxu1  ;;  %v649_v52 = vadd.f32 %v648_v30, %v574_v51 }
  0xec   :  { %v802_v37 = vpop.f32.mrf.mxu3 }
  0xed   :  { %v803_v43 = vadd.f32 %v802_v37, %v761_v34  ;;  %v702_v59 = vadd.f32 %v701_v24, %v649_v52 }
  0xf2   :  { %v3287_v39 = vpop.f32.mrf.mxu0  ;;  %v832_v40 = vpop.f32.mrf.mxu2 }
  0xf3   :  { %v3290_v46 = vpop.f32.mrf.mxu1  ;;  %v833_v49 = vadd.f32 %v832_v40, %v803_v43  ;;  %v653_v43 = vadd.f32 %v3287_v39, %v3273_v19 }
  0xf4   :  { %v859_v47 = vpop.f32.mrf.mxu3 }
  0xf5   :  { %v860_v54 = vadd.f32 %v859_v47, %v833_v49 }
  0xfa   :  { %v3293_v3 = vpop.f32.mrf.mxu0  ;;  %v892_v1 = vpop.f32.mrf.mxu2 }
  0xfb   :  { %v893_v55 = vadd.f32 %v892_v1, %v860_v54  ;;  %v713_v48 = vpop.f32.mrf.mxu1  ;;  %v706_v54 = vadd.f32 %v3284_v36, %v653_v43 }
  0xfc   :  { %v917_v58 = vpop.f32.mrf.mxu3 }
  0xfd   :  { %v918_v60 = vadd.f32 %v917_v58, %v893_v55 }
  0xff   :  { %v920_v63 = vadd.f32 %v918_v60, %v702_v59 }
 0x101   :  { %2584 = vtanh.f32 %v920_v63 }
 0x102   :  { %v660_v25 = vpop.f32.mrf.mxu0 }
 0x103   :  { %v661_v0 = vadd.f32 %v660_v25, %v592_v41  ;;  %v717_v6 = vpop.f32.mrf.mxu1 }
 0x105   :  { %v3295_v5 = vadd.f32 %v713_v48, %v661_v0 }
 0x107   :  { %v2585_v7 = vpop.eup %2584 }
 0x108   :  { %v923_v44 = vsel %vm305_vm1, %v2585_v7, 0 }
 0x109   :  { %v945_v8 = vand.u32 4294901760, %v923_v44 }
 0x10a   :  { %v664_v9 = vpop.f32.mrf.mxu0 }
 0x10b   :  { %v665_v10 = vadd.f32 %v664_v9, %v598_v53  ;;  %v946_v11 = vsub.f32 %v923_v44, %v945_v8  ;;  %991 = vmatmul.f32.vlgmr.msra.gmra.mxu3 %v945_v8  ;;  %v721_v41 = vpop.f32.mrf.mxu1 }
 0x10c   :  { %1098 = vmatpush.msra.mxu3 %v2684_v12 }
 0x10d   :  { %v3299_v17 = vadd.f32 %v717_v6, %v665_v10  ;;  %v947_v20 = vand.u32 4294901760, %v946_v11  ;;  %v657_v10 = vadd.f32 %v3293_v3, %v3275_v32 }
 0x10e   :  { %1100 = vmatpush.msra.mxu3 %v2811_v45 }
 0x10f   :  { %v948_v22 = vsub.f32 %v946_v11, %v947_v20 }
 0x110   :  { %1102 = vmatpush.msra.mxu3 %v2921_v13 }
 0x111   :  { %v949_v24 = vand.u32 4294901760, %v948_v22 }
 0x112   :  { %v668_v26 = vpop.f32.mrf.mxu0  ;;  %1104 = vmatpush.msra.mxu3 %v3055_v56 }
 0x113   :  { %v669_v27 = vadd.f32 %v668_v26, %v3277_v2  ;;  %950 = vmatmul.f32.vlgmr.msra.gmra.mxu2 %v949_v24  ;;  %1048 = vmatmul.f32.vlgmr.msrb.gmra.mxu3 %v947_v20  ;;  %v725_v30 = vpop.f32.mrf.mxu1  ;;  %v710_v24 = vadd.f32 %v3290_v46, %v657_v10 }
 0x114   :  { %1067 = vmatpush.msra.mxu2 %v2716_v21  ;;  %1161 = vmatpush.msrb.mxu3 %v2752_v33 }
 0x115   :  { %v3307_v53 = vadd.f32 %v721_v41, %v669_v27 }
 0x116   :  { %1071 = vmatpush.msra.mxu2 %v2852_v57  ;;  %1167 = vmatpush.msrb.mxu3 %v2868_v62 }
 0x118   :  { %1075 = vmatpush.msra.mxu2 %v2948_v23  ;;  %1173 = vmatpush.msrb.mxu3 %v2986_v31 }
 0x11a   :  { %v672_v28 = vpop.f32.mrf.mxu0  ;;  %1079 = vmatpush.msra.mxu2 %v3087_v4  ;;  %1179 = vmatpush.msrb.mxu3 %v3122_v14 }
 0x11b   :  { %v673_v2 = vadd.f32 %v672_v28, %v3279_v16  ;;  %1021 = vmatmul.f32.vlgmr.msrb.gmra.mxu2 %v946_v11  ;;  %1106 = vmatmul.f32.vlgmr.msra.gmra.mxu3 %v945_v8  ;;  %v3360_v6 = vpop.f32.mrf.mxu1 }
 0x11c   :  { %1128 = vmatpush.msrb.mxu2 %v2684_v12  ;;  %1228 = vmatpush.msra.mxu3 %v2684_v12 }
 0x11d   :  { %v3318_v34 = vadd.f32 %v725_v30, %v673_v2 }
 0x11e   :  { %1130 = vmatpush.msrb.mxu2 %v2811_v45  ;;  %1230 = vmatpush.msra.mxu3 %v2811_v45 }
 0x120   :  { %1132 = vmatpush.msrb.mxu2 %v2921_v13  ;;  %1232 = vmatpush.msra.mxu3 %v2921_v13 }
 0x122   :  { %1134 = vmatpush.msrb.mxu2 %v3055_v56  ;;  %1234 = vmatpush.msra.mxu3 %v3055_v56  ;;  %v3358_v0 = vpop.f32.mrf.mxu0 }
 0x123   :  { %1081 = vmatmul.f32.vlgmr.msra.gmra.mxu2 %v945_v8 }
 0x124   :  { %1199 = vmatpush.msra.mxu2 %v2695_v15 }
 0x126   :  { %1202 = vmatpush.msra.mxu2 %v2829_v50 }
 0x128   :  { %1205 = vmatpush.msra.mxu2 %v2936_v18 }
 0x12a   :  { %1208 = vmatpush.msra.mxu2 %v3069_v61 }
 0x18e   :  { %v992_v16 = vpop.f32.mrf.mxu3 }
 0x196   :  { %v951_v35 = vpop.f32.mrf.mxu2  ;;  %v1049_v37 = vpop.f32.mrf.mxu3 }
 0x197   :  { %v993_v40 = vadd.f32 %v992_v16, %v951_v35 }
 0x19e   :  { %v1022_v38 = vpop.f32.mrf.mxu2  ;;  %v1107_v52 = vpop.f32.mrf.mxu3 }
 0x19f   :  { %v1023_v42 = vadd.f32 %v1022_v38, %v993_v40 }
 0x1a1   :  { %v1050_v47 = vadd.f32 %v1049_v37, %v1023_v42 }
 0x1a6   :  { %v1082_v49 = vpop.f32.mrf.mxu2 }
 0x1a7   :  { %v1083_v51 = vadd.f32 %v1082_v49, %v1050_v47 }
 0x1a9   :  { %v1108_v1 = vadd.f32 %v1107_v52, %v1083_v51 }
 0x1ab   :  { %v1110_v55 = vadd.f32 %v1108_v1, %v706_v54 }
 0x1ad   :  { %2586 = vtanh.f32 %v1110_v55 }
 0x1b3   :  { %v2587_v58 = vpop.eup %2586 }
 0x1b4   :  { %v1113_v48 = vsel %vm305_vm1, %v2587_v58, 0 }
 0x1b5   :  { %v1135_v59 = vand.u32 4294901760, %v1113_v48 }
 0x1b7   :  { %v1136_v60 = vsub.f32 %v1113_v48, %v1135_v59  ;;  %1181 = vmatmul.f32.vlgmr.msrb.gmra.mxu3 %v1135_v59  ;;  %1271 = vmatmul.f32.vlgmr.msra.gmra.mxu0 %v1135_v59 }
 0x1b8   :  { %1296 = vmatmul.f32.vlgmr.msra.gmra.mxu1 %v1135_v59  ;;  %1351 = vmatpush.msrb.mxu3 %v2752_v33 }
 0x1b9   :  { %v1137_v19 = vand.u32 4294901760, %v1136_v60  ;;  %1541 = vmatpush.msra.mxu1 %v2752_v33  ;;  %1508 = vmatpush.msra.mxu0 %v2684_v12 }
 0x1ba   :  { %1357 = vmatpush.msrb.mxu3 %v2868_v62 }
 0x1bb   :  { %v1138_v36 = vsub.f32 %v1136_v60, %v1137_v19  ;;  %1547 = vmatpush.msra.mxu1 %v2868_v62  ;;  %1510 = vmatpush.msra.mxu0 %v2811_v45 }
 0x1bc   :  { %1363 = vmatpush.msrb.mxu3 %v2986_v31 }
 0x1bd   :  { %v1139_v39 = vand.u32 4294901760, %v1138_v36  ;;  %1553 = vmatpush.msra.mxu1 %v2986_v31  ;;  %1512 = vmatpush.msra.mxu0 %v2921_v13 }
 0x1be   :  { %1369 = vmatpush.msrb.mxu3 %v3122_v14 }
 0x1bf   :  { %1140 = vmatmul.f32.vlgmr.msrb.gmra.mxu2 %v1139_v39  ;;  %1238 = vmatmul.f32.vlgmr.msra.gmra.mxu3 %v1137_v19 }
 0x1c0   :  { %1318 = vmatpush.msrb.mxu2 %v2684_v12  ;;  %1478 = vmatpush.msra.mxu3 %v2684_v12 }
 0x1c1   :  { %1559 = vmatpush.msra.mxu1 %v3122_v14  ;;  %1514 = vmatpush.msra.mxu0 %v3055_v56 }
 0x1c2   :  { %1320 = vmatpush.msrb.mxu2 %v2811_v45  ;;  %1480 = vmatpush.msra.mxu3 %v2811_v45 }
 0x1c4   :  { %1322 = vmatpush.msrb.mxu2 %v2921_v13  ;;  %1482 = vmatpush.msra.mxu3 %v2921_v13 }
 0x1c6   :  { %1324 = vmatpush.msrb.mxu2 %v3055_v56  ;;  %1484 = vmatpush.msra.mxu3 %v3055_v56 }
 0x1c7   :  { %1211 = vmatmul.f32.vlgmr.msra.gmra.mxu2 %v1136_v60 }
 0x1c8   :  { %1447 = vmatpush.msra.mxu2 %v2716_v21 }
 0x1ca   :  { %1451 = vmatpush.msra.mxu2 %v2852_v57 }
 0x1cc   :  { %1455 = vmatpush.msra.mxu2 %v2948_v23 }
 0x1ce   :  { %1459 = vmatpush.msra.mxu2 %v3087_v4 }
 0x234   :  { %v1272_v20 = vpop.f32.mrf.mxu0 }
 0x235   :  { %v1297_v41 = vpop.f32.mrf.mxu1 }
 0x23a   :  { %v1182_v63 = vpop.f32.mrf.mxu3 }
 0x242   :  { %v1141_v25 = vpop.f32.mrf.mxu2  ;;  %v1239_v9 = vpop.f32.mrf.mxu3 }
 0x243   :  { %v1183_v7 = vadd.f32 %v1182_v63, %v1141_v25 }
 0x24a   :  { %v1212_v44 = vpop.f32.mrf.mxu2 }
 0x24b   :  { %v1213_v8 = vadd.f32 %v1212_v44, %v1183_v7 }
 0x24d   :  { %v1240_v11 = vadd.f32 %v1239_v9, %v1213_v8 }
 0x24f   :  { %v1273_v22 = vadd.f32 %v1272_v20, %v1240_v11 }
 0x251   :  { %v1298_v26 = vadd.f32 %v1297_v41, %v1273_v22 }
 0x253   :  { %v1300_v27 = vadd.f32 %v1298_v26, %v710_v24 }
 0x255   :  { %2588 = vtanh.f32 %v1300_v27 }
 0x25b   :  { %v2589_v28 = vpop.eup %2588 }
 0x25c   :  { %v1303_v30 = vsel %vm305_vm1, %v2589_v28, 0 }
 0x25d   :  { %v1325_v2 = vand.u32 4294901760, %v1303_v30 }
 0x25f   :  { %1371 = vmatmul.f32.vlgmr.msrb.gmra.mxu3 %v1325_v2  ;;  %v1326_v16 = vsub.f32 %v1303_v30, %v1325_v2 }
 0x260   :  { %1608 = vmatpush.msrb.mxu3 %v2684_v12 }
 0x261   :  { %1401 = vmatmul.f32.vlgmr.msrb.gmra.mxu0 %v1326_v16  ;;  %v1327_v35 = vand.u32 4294901760, %v1326_v16 }
 0x262   :  { %1610 = vmatpush.msrb.mxu3 %v2811_v45  ;;  %1637 = vmatpush.msrb.mxu0 %v2716_v21 }
 0x263   :  { %1428 = vmatmul.f32.vlgmr.msrb.gmra.mxu1 %v1327_v35  ;;  %v1328_v32 = vsub.f32 %v1326_v16, %v1327_v35 }
 0x264   :  { %1612 = vmatpush.msrb.mxu3 %v2921_v13  ;;  %1668 = vmatpush.msrb.mxu1 %v2684_v12 }
 0x265   :  { %v1329_v46 = vand.u32 4294901760, %v1328_v32  ;;  %1641 = vmatpush.msrb.mxu0 %v2852_v57 }
 0x266   :  { %1614 = vmatpush.msrb.mxu3 %v3055_v56  ;;  %1670 = vmatpush.msrb.mxu1 %v2811_v45 }
 0x267   :  { %1330 = vmatmul.f32.vlgmr.msrb.gmra.mxu2 %v1329_v46  ;;  %1486 = vmatmul.f32.vlgmr.msra.gmra.mxu3 %v1325_v2 }
 0x268   :  { %1579 = vmatpush.msrb.mxu2 %v2695_v15  ;;  %1672 = vmatpush.msrb.mxu1 %v2921_v13 }
 0x269   :  { %1645 = vmatpush.msrb.mxu0 %v2948_v23  ;;  %1731 = vmatpush.msra.mxu3 %v2752_v33 }
 0x26a   :  { %1582 = vmatpush.msrb.mxu2 %v2829_v50  ;;  %1674 = vmatpush.msrb.mxu1 %v3055_v56 }
 0x26b   :  { %1649 = vmatpush.msrb.mxu0 %v3087_v4  ;;  %1737 = vmatpush.msra.mxu3 %v2868_v62 }
 0x26c   :  { %1585 = vmatpush.msrb.mxu2 %v2936_v18 }
 0x26d   :  { %1743 = vmatpush.msra.mxu3 %v2986_v31 }
 0x26e   :  { %1588 = vmatpush.msrb.mxu2 %v3069_v61 }
 0x26f   :  { %1461 = vmatmul.f32.vlgmr.msra.gmra.mxu2 %v1325_v2  ;;  %1749 = vmatpush.msra.mxu3 %v3122_v14 }
 0x270   :  { %1698 = vmatpush.msra.mxu2 %v2684_v12 }
 0x272   :  { %1700 = vmatpush.msra.mxu2 %v2811_v45 }
 0x274   :  { %1702 = vmatpush.msra.mxu2 %v2921_v13 }
 0x276   :  { %1704 = vmatpush.msra.mxu2 %v3055_v56 }
 0x2de   :  { %v1402_v40 = vpop.f32.mrf.mxu0 }
 0x2e0   :  { %v1429_v43 = vpop.f32.mrf.mxu1 }
 0x2e2   :  { %v1372_v3 = vpop.f32.mrf.mxu3 }
 0x2ea   :  { %v1331_v37 = vpop.f32.mrf.mxu2  ;;  %v1487_v52 = vpop.f32.mrf.mxu3 }
 0x2eb   :  { %v1373_v38 = vadd.f32 %v1372_v3, %v1331_v37 }
 0x2ed   :  { %v1403_v42 = vadd.f32 %v1402_v40, %v1373_v38 }
 0x2ef   :  { %v1430_v47 = vadd.f32 %v1429_v43, %v1403_v42 }
 0x2f2   :  { %v1462_v49 = vpop.f32.mrf.mxu2 }
 0x2f3   :  { %v1463_v51 = vadd.f32 %v1462_v49, %v1430_v47 }
 0x2f5   :  { %v1488_v54 = vadd.f32 %v1487_v52, %v1463_v51 }
 0x2f7   :  { %v1490_v1 = vadd.f32 %v1488_v54, %v3295_v5 }
 0x2f9   :  { %2590 = vtanh.f32 %v1490_v1 }
 0x2ff   :  { %v2591_v55 = vpop.eup %2590 }
 0x300   :  { %v1493_v58 = vsel %vm305_vm1, %v2591_v55, 0 }
 0x301   :  { %v1515_v48 = vand.u32 4294901760, %v1493_v58 }
 0x303   :  { %1561 = vmatmul.f32.vlgmr.msra.gmra.mxu1 %v1515_v48  ;;  %v1516_v59 = vsub.f32 %v1493_v58, %v1515_v48 }
 0x304   :  { %1798 = vmatpush.msra.mxu1 %v2684_v12 }
 0x305   :  { %1591 = vmatmul.f32.vlgmr.msrb.gmra.mxu2 %v1516_v59  ;;  %v1517_v60 = vand.u32 4294901760, %v1516_v59 }
 0x306   :  { %1800 = vmatpush.msra.mxu1 %v2811_v45  ;;  %1827 = vmatpush.msrb.mxu2 %v2716_v21 }
 0x307   :  { %1618 = vmatmul.f32.vlgmr.msrb.gmra.mxu3 %v1517_v60  ;;  %v1518_v19 = vsub.f32 %v1516_v59, %v1517_v60  ;;  %v2255_v60 = vld [vmem:[%s3487_s3 + $0x18] sm:$0xff] }
 0x308   :  { %1802 = vmatpush.msra.mxu1 %v2921_v13  ;;  %1858 = vmatpush.msrb.mxu3 %v2684_v12 }
 0x309   :  { %v1519_v5 = vand.u32 4294901760, %v1518_v19  ;;  %1831 = vmatpush.msrb.mxu2 %v2852_v57  ;;  %v2254_v19 = vld [vmem:[%s3487_s3 + $0x10] sm:$0xff] }
 0x30a   :  { %1804 = vmatpush.msra.mxu1 %v3055_v56  ;;  %1860 = vmatpush.msrb.mxu3 %v2811_v45 }
 0x30b   :  { %1520 = vmatmul.f32.vlgmr.msra.gmra.mxu0 %v1519_v5  ;;  %1676 = vmatmul.f32.vlgmr.msrb.gmra.mxu1 %v1515_v48 }
 0x30c   :  { %1769 = vmatpush.msra.mxu0 %v2695_v15  ;;  %1862 = vmatpush.msrb.mxu3 %v2921_v13 }
 0x30d   :  { %1835 = vmatpush.msrb.mxu2 %v2948_v23  ;;  %1921 = vmatpush.msrb.mxu1 %v2752_v33 }
 0x30e   :  { %1772 = vmatpush.msra.mxu0 %v2829_v50  ;;  %1864 = vmatpush.msrb.mxu3 %v3055_v56 }
 0x30f   :  { %1839 = vmatpush.msrb.mxu2 %v3087_v4  ;;  %1927 = vmatpush.msrb.mxu1 %v2868_v62 }
 0x310   :  { %1775 = vmatpush.msra.mxu0 %v2936_v18 }
 0x311   :  { %1933 = vmatpush.msrb.mxu1 %v2986_v31 }
 0x312   :  { %1778 = vmatpush.msra.mxu0 %v3069_v61 }
 0x313   :  { %1651 = vmatmul.f32.vlgmr.msrb.gmra.mxu0 %v1515_v48  ;;  %1939 = vmatpush.msrb.mxu1 %v3122_v14 }
 0x314   :  { %1888 = vmatpush.msrb.mxu0 %v2684_v12 }
 0x316   :  { %1890 = vmatpush.msrb.mxu0 %v2811_v45 }
 0x318   :  { %1892 = vmatpush.msrb.mxu0 %v2921_v13 }
 0x31a   :  { %1894 = vmatpush.msrb.mxu0 %v3055_v56 }
 0x380   :  { %v1562_v36 = vpop.f32.mrf.mxu1 }
 0x388   :  { %v1521_v39 = vpop.f32.mrf.mxu0  ;;  %v1592_v25 = vpop.f32.mrf.mxu2 }
 0x389   :  { %v1563_v63 = vadd.f32 %v1562_v36, %v1521_v39  ;;  %v1677_v11 = vpop.f32.mrf.mxu1  ;;  %v2275_v36 = vand.u32 4294901760, %v2254_v19  ;;  %v2253_v39 = vld [vmem:[%s3487_s3 + $0x8] sm:$0xff] }
 0x38a   :  { %v1619_v44 = vpop.f32.mrf.mxu3 }
 0x38b   :  { %v1593_v7 = vadd.f32 %v1592_v25, %v1563_v63  ;;  %v2309_v25 = vsub.f32 %v2254_v19, %v2275_v36 }
 0x38d   :  { %v1620_v8 = vadd.f32 %v1619_v44, %v1593_v7  ;;  %v2277_v7 = vand.u32 4294901760, %v2253_v39  ;;  %v2252_v44 = vld [vmem:[%s3487_s3] sm:$0xff] }
 0x390   :  { %v1652_v9 = vpop.f32.mrf.mxu0 }
 0x391   :  { %v1653_v10 = vadd.f32 %v1652_v9, %v1620_v8  ;;  %v2310_v9 = vand.u32 4294901760, %v2309_v25 }
 0x393   :  { %v1678_v20 = vadd.f32 %v1677_v11, %v1653_v10  ;;  %v2315_v10 = vsub.f32 %v2253_v39, %v2277_v7  ;;  %v2279_v11 = vand.u32 4294901760, %v2252_v44 }
 0x395   :  { %v1680_v22 = vadd.f32 %v1678_v20, %v3299_v17 }
 0x397   :  { %2592 = vtanh.f32 %v1680_v22  ;;  %v2311_v22 = vsub.f32 %v2309_v25, %v2310_v9 }
 0x39d   :  { %v2593_v41 = vpop.eup %2592 }
 0x39e   :  { %v1683_v24 = vsel %vm305_vm1, %v2593_v41, 0  ;;  %v2316_v41 = vand.u32 4294901760, %v2315_v10 }
 0x39f   :  { %v1705_v26 = vand.u32 4294901760, %v1683_v24 }
 0x3a1   :  { %1751 = vmatmul.f32.vlgmr.msra.gmra.mxu3 %v1705_v26  ;;  %v1706_v27 = vsub.f32 %v1683_v24, %v1705_v26  ;;  %v2321_v24 = vsub.f32 %v2252_v44, %v2279_v11 }
 0x3a2   :  { %1988 = vmatpush.msra.mxu3 %v2684_v12 }
 0x3a3   :  { %1781 = vmatmul.f32.vlgmr.msra.gmra.mxu0 %v1706_v27  ;;  %v1707_v28 = vand.u32 4294901760, %v1706_v27 }
 0x3a4   :  { %1990 = vmatpush.msra.mxu3 %v2811_v45  ;;  %2017 = vmatpush.msra.mxu0 %v2716_v21 }
 0x3a5   :  { %1808 = vmatmul.f32.vlgmr.msra.gmra.mxu1 %v1707_v28  ;;  %v1708_v30 = vsub.f32 %v1706_v27, %v1707_v28  ;;  %v2317_v27 = vsub.f32 %v2315_v10, %v2316_v41  ;;  %v2322_v28 = vand.u32 4294901760, %v2321_v24 }
 0x3a6   :  { %1992 = vmatpush.msra.mxu3 %v2921_v13  ;;  %2048 = vmatpush.msra.mxu1 %v2684_v12 }
 0x3a7   :  { %v1709_v17 = vand.u32 4294901760, %v1708_v30  ;;  %2021 = vmatpush.msra.mxu0 %v2852_v57  ;;  %v2318_v30 = vand.u32 4294901760, %v2317_v27 }
 0x3a8   :  { %1994 = vmatpush.msra.mxu3 %v3055_v56  ;;  %2050 = vmatpush.msra.mxu1 %v2811_v45 }
 0x3a9   :  { %1710 = vmatmul.f32.vlgmr.msra.gmra.mxu2 %v1709_v17  ;;  %1866 = vmatmul.f32.vlgmr.msrb.gmra.mxu3 %v1705_v26  ;;  %v2323_v17 = vsub.f32 %v2321_v24, %v2322_v28 }
 0x3aa   :  { %1959 = vmatpush.msra.mxu2 %v2695_v15  ;;  %2052 = vmatpush.msra.mxu1 %v2921_v13 }
 0x3ab   :  { %2025 = vmatpush.msra.mxu0 %v2948_v23  ;;  %2111 = vmatpush.msrb.mxu3 %v2752_v33 }
 0x3ac   :  { %1962 = vmatpush.msra.mxu2 %v2829_v50  ;;  %2054 = vmatpush.msra.mxu1 %v3055_v56 }
 0x3ad   :  { %2029 = vmatpush.msra.mxu0 %v3087_v4  ;;  %2117 = vmatpush.msrb.mxu3 %v2868_v62 }
 0x3ae   :  { %1965 = vmatpush.msra.mxu2 %v2936_v18 }
 0x3af   :  { %2123 = vmatpush.msrb.mxu3 %v2986_v31 }
 0x3b0   :  { %1968 = vmatpush.msra.mxu2 %v3069_v61 }
 0x3b1   :  { %1841 = vmatmul.f32.vlgmr.msrb.gmra.mxu2 %v1705_v26  ;;  %2129 = vmatpush.msrb.mxu3 %v3122_v14  ;;  %v2312_v26 = vand.u32 4294901760, %v2311_v22 }
 0x3b2   :  { %2078 = vmatpush.msrb.mxu2 %v2684_v12 }
 0x3b4   :  { %2080 = vmatpush.msrb.mxu2 %v2811_v45 }
 0x3b6   :  { %2082 = vmatpush.msrb.mxu2 %v2921_v13 }
 0x3b8   :  { %2084 = vmatpush.msrb.mxu2 %v3055_v56 }
 0x420   :  { %v1782_v16 = vpop.f32.mrf.mxu0 }
 0x422   :  { %v1809_v32 = vpop.f32.mrf.mxu1 }
 0x424   :  { %v1752_v33 = vpop.f32.mrf.mxu3 }
 0x42c   :  { %v1711_v2 = vpop.f32.mrf.mxu2  ;;  %v1867_v37 = vpop.f32.mrf.mxu3 }
 0x42d   :  { %v1753_v62 = vadd.f32 %v1752_v33, %v1711_v2  ;;  %v2324_v33 = vand.u32 4294901760, %v2323_v17 }
 0x42f   :  { %v1783_v35 = vadd.f32 %v1782_v16, %v1753_v62 }
 0x431   :  { %v1810_v31 = vadd.f32 %v1809_v32, %v1783_v35 }
 0x434   :  { %v1842_v46 = vpop.f32.mrf.mxu2 }
 0x435   :  { %v1843_v3 = vadd.f32 %v1842_v46, %v1810_v31  ;;  %v677_v46 = vadd.f32 %v3358_v0, %v3281_v29  ;;  %v2583_v0 = vld [vmem:[%s3487_s3 + $0x20] ss:$0 sm:$0xff] }
 0x437   :  { %v1868_v38 = vadd.f32 %v1867_v37, %v1843_v3 }
 0x439   :  { %v1870_v14 = vadd.f32 %v1868_v38, %v3307_v53 }
 0x43b   :  { %2594 = vtanh.f32 %v1870_v14 }
 0x441   :  { %v2595_v40 = vpop.eup %2594 }
 0x442   :  { %v1873_v42 = vsel %vm305_vm1, %v2595_v40, 0  ;;  %v730_v40 = vadd.f32 %v3360_v6, %v677_v46 }
 0x443   :  { %v1895_v43 = vand.u32 4294901760, %v1873_v42 }
 0x445   :  { %1941 = vmatmul.f32.vlgmr.msrb.gmra.mxu1 %v1895_v43  ;;  %v1896_v47 = vsub.f32 %v1873_v42, %v1895_v43 }
 0x446   :  { %2178 = vmatpush.msrb.mxu1 %v2684_v12 }
 0x447   :  { %1971 = vmatmul.f32.vlgmr.msra.gmra.mxu2 %v1896_v47  ;;  %v1897_v49 = vand.u32 4294901760, %v1896_v47 }
 0x448   :  { %2180 = vmatpush.msrb.mxu1 %v2811_v45  ;;  %2207 = vmatpush.msra.mxu2 %v2716_v21 }
 0x449   :  { %1998 = vmatmul.f32.vlgmr.msra.gmra.mxu3 %v1897_v49  ;;  %v1898_v51 = vsub.f32 %v1896_v47, %v1897_v49 }
 0x44a   :  { %2182 = vmatpush.msrb.mxu1 %v2921_v13  ;;  %2238 = vmatpush.msra.mxu3 %v2684_v12 }
 0x44b   :  { %v1899_v53 = vand.u32 4294901760, %v1898_v51  ;;  %2211 = vmatpush.msra.mxu2 %v2852_v57 }
 0x44c   :  { %2184 = vmatpush.msrb.mxu1 %v3055_v56  ;;  %2240 = vmatpush.msra.mxu3 %v2811_v45 }
 0x44d   :  { %1900 = vmatmul.f32.vlgmr.msrb.gmra.mxu0 %v1899_v53  ;;  %2056 = vmatmul.f32.vlgmr.msra.gmra.mxu1 %v1895_v43 }
 0x44e   :  { %2149 = vmatpush.msrb.mxu0 %v2695_v15  ;;  %2242 = vmatpush.msra.mxu3 %v2921_v13 }
 0x44f   :  { %2215 = vmatpush.msra.mxu2 %v2948_v23 }
 0x450   :  { %2152 = vmatpush.msrb.mxu0 %v2829_v50  ;;  %2244 = vmatpush.msra.mxu3 %v3055_v56 }
 0x451   :  { %2219 = vmatpush.msra.mxu2 %v3087_v4 }
 0x452   :  { %2155 = vmatpush.msrb.mxu0 %v2936_v18 }
 0x454   :  { %2158 = vmatpush.msrb.mxu0 %v3069_v61 }
 0x455   :  { %2031 = vmatmul.f32.vlgmr.msra.gmra.mxu0 %v1895_v43 }
 0x4c2   :  { %v1942_v12 = vpop.f32.mrf.mxu1 }
 0x4ca   :  { %v1901_v21 = vpop.f32.mrf.mxu0  ;;  %v1972_v57 = vpop.f32.mrf.mxu2 }
 0x4cb   :  { %v1943_v45 = vadd.f32 %v1942_v12, %v1901_v21  ;;  %v2057_v1 = vpop.f32.mrf.mxu1 }
 0x4cc   :  { %v1999_v52 = vpop.f32.mrf.mxu3 }
 0x4cd   :  { %v1973_v15 = vadd.f32 %v1972_v57, %v1943_v45 }
 0x4cf   :  { %v2000_v13 = vadd.f32 %v1999_v52, %v1973_v15 }
 0x4d2   :  { %v2032_v54 = vpop.f32.mrf.mxu0 }
 0x4d3   :  { %v2033_v23 = vadd.f32 %v2032_v54, %v2000_v13 }
 0x4d5   :  { %v2058_v50 = vadd.f32 %v2057_v1, %v2033_v23 }
 0x4d7   :  { %v2060_v56 = vadd.f32 %v2058_v50, %v3318_v34  ;;  %v2273_v34 = vand.u32 4294901760, %v2255_v60 }
 0x4d9   :  { %2596 = vtanh.f32 %v2060_v56  ;;  %v2303_v5 = vsub.f32 %v2255_v60, %v2273_v34  ;;  %2274 = vmatpush.msra.mxu0 %v2273_v34 }
 0x4db   :  { %v2304_v63 = vand.u32 4294901760, %v2303_v5  ;;  %2276 = vmatpush.msra.mxu0 %v2275_v36 }
 0x4dd   :  { %v2305_v8 = vsub.f32 %v2303_v5, %v2304_v63  ;;  %2278 = vmatpush.msra.mxu0 %v2277_v7 }
 0x4df   :  { %v2597_v4 = vpop.eup %2596  ;;  %v2306_v20 = vand.u32 4294901760, %v2305_v8  ;;  %2280 = vmatpush.msra.mxu0 %v2279_v11 }
 0x4e0   :  { %v2063_v18 = vsel %vm305_vm1, %v2597_v4, 0 }
 0x4e1   :  { %v2085_v55 = vand.u32 4294901760, %v2063_v18  ;;  %2307 = vmatpush.msra.mxu1 %v2306_v20 }
 0x4e3   :  { %2131 = vmatmul.f32.vlgmr.msrb.gmra.mxu3 %v2085_v55  ;;  %v2086_v61 = vsub.f32 %v2063_v18, %v2085_v55  ;;  %2313 = vmatpush.msra.mxu1 %v2312_v26 }
 0x4e4   :  { %2374 = vmatpush.msrb.mxu3 %v2273_v34 }
 0x4e5   :  { %2161 = vmatmul.f32.vlgmr.msrb.gmra.mxu0 %v2086_v61  ;;  %v2087_v58 = vand.u32 4294901760, %v2086_v61  ;;  %2319 = vmatpush.msra.mxu1 %v2318_v30 }
 0x4e6   :  { %2376 = vmatpush.msrb.mxu3 %v2275_v36  ;;  %2403 = vmatpush.msrb.mxu0 %v2304_v63 }
 0x4e7   :  { %2188 = vmatmul.f32.vlgmr.msrb.gmra.mxu1 %v2087_v58  ;;  %v2088_v48 = vsub.f32 %v2086_v61, %v2087_v58 }
 0x4e8   :  { %2378 = vmatpush.msrb.mxu3 %v2277_v7  ;;  %2407 = vmatpush.msrb.mxu0 %v2310_v9 }
 0x4e9   :  { %v2089_v59 = vand.u32 4294901760, %v2088_v48  ;;  %2325 = vmatpush.msra.mxu1 %v2324_v33 }
 0x4ea   :  { %2380 = vmatpush.msrb.mxu3 %v2279_v11  ;;  %2411 = vmatpush.msrb.mxu0 %v2316_v41 }
 0x4eb   :  { %2090 = vmatmul.f32.vlgmr.msrb.gmra.mxu2 %v2089_v59  ;;  %2246 = vmatmul.f32.vlgmr.msra.gmra.mxu3 %v2085_v55 }
 0x4ec   :  { %2345 = vmatpush.msrb.mxu2 %v2303_v5  ;;  %2434 = vmatpush.msrb.mxu1 %v2273_v34 }
 0x4ed   :  { %2415 = vmatpush.msrb.mxu0 %v2322_v28 }
 0x4ee   :  { %2348 = vmatpush.msrb.mxu2 %v2309_v25  ;;  %2436 = vmatpush.msrb.mxu1 %v2275_v36 }
 0x4f0   :  { %2351 = vmatpush.msrb.mxu2 %v2315_v10  ;;  %2438 = vmatpush.msrb.mxu1 %v2277_v7 }
 0x4f2   :  { %2354 = vmatpush.msrb.mxu2 %v2321_v24  ;;  %2440 = vmatpush.msrb.mxu1 %v2279_v11 }
 0x4f3   :  { %2221 = vmatmul.f32.vlgmr.msra.gmra.mxu2 %v2085_v55 }
 0x562   :  { %v2162_v35 = vpop.f32.mrf.mxu0 }
 0x564   :  { %v2189_v31 = vpop.f32.mrf.mxu1 }
 0x566   :  { %v2132_v2 = vpop.f32.mrf.mxu3 }
 0x56e   :  { %v2091_v62 = vpop.f32.mrf.mxu2  ;;  %v2247_v14 = vpop.f32.mrf.mxu3 }
 0x56f   :  { %v2133_v16 = vadd.f32 %v2132_v2, %v2091_v62 }
 0x571   :  { %v2163_v32 = vadd.f32 %v2162_v35, %v2133_v16 }
 0x573   :  { %v2190_v3 = vadd.f32 %v2189_v31, %v2163_v32 }
 0x576   :  { %v2222_v37 = vpop.f32.mrf.mxu2 }
 0x577   :  { %v2223_v38 = vadd.f32 %v2222_v37, %v2190_v3 }
 0x579   :  { %v2248_v42 = vadd.f32 %v2247_v14, %v2223_v38 }
 0x57b   :  { %v2250_v43 = vadd.f32 %v2248_v42, %v730_v40 }
 0x57d   :  { %2598 = vtanh.f32 %v2250_v43 }
 0x583   :  { %v2599_v47 = vpop.eup %2598 }
 0x584   :  { %v2259_v49 = vsel %vm305_vm1, %v2599_v47, 0 }
 0x585   :  { %v2281_v51 = vand.u32 4294901760, %v2259_v49 }
 0x587   :  { %2327 = vmatmul.f32.vlgmr.msra.gmra.mxu1 %v2281_v51  ;;  %v2282_v53 = vsub.f32 %v2259_v49, %v2281_v51 }
 0x589   :  { %2357 = vmatmul.f32.vlgmr.msrb.gmra.mxu2 %v2282_v53  ;;  %v2283_v12 = vand.u32 4294901760, %v2282_v53 }
 0x58b   :  { %2384 = vmatmul.f32.vlgmr.msrb.gmra.mxu3 %v2283_v12  ;;  %v2284_v21 = vsub.f32 %v2282_v53, %v2283_v12 }
 0x58d   :  { %v2285_v29 = vand.u32 4294901760, %v2284_v21 }
 0x58f   :  { %2286 = vmatmul.f32.vlgmr.msra.gmra.mxu0 %v2285_v29  ;;  %2442 = vmatmul.f32.vlgmr.msrb.gmra.mxu1 %v2281_v51 }
 0x597   :  { %2417 = vmatmul.f32.vlgmr.msrb.gmra.mxu0 %v2281_v51 }
 0x604   :  { %v2328_v6 = vpop.f32.mrf.mxu1 }
 0x60c   :  { %v2287_v45 = vpop.f32.mrf.mxu0  ;;  %v2358_v52 = vpop.f32.mrf.mxu2 }
 0x60d   :  { %v2288_v57 = vadd.f32 %v2583_v0, %v2287_v45  ;;  %v2443_v56 = vpop.f32.mrf.mxu1 }
 0x60e   :  { %v2385_v54 = vpop.f32.mrf.mxu3 }
 0x60f   :  { %v2329_v15 = vadd.f32 %v2328_v6, %v2288_v57 }
 0x611   :  { %v2359_v13 = vadd.f32 %v2358_v52, %v2329_v15 }
 0x613   :  { %v2386_v23 = vadd.f32 %v2385_v54, %v2359_v13 }
 0x614   :  { %v2418_v1 = vpop.f32.mrf.mxu0 }
 0x615   :  { %v2419_v50 = vadd.f32 %v2418_v1, %v2386_v23 }
 0x617   :  { %v2444_v4 = vadd.f32 %v2443_v56, %v2419_v50 }
 0x619   :  { %2447 = vst.msk [vmem:[%s3488_s4] sm:$0xff] %vm2446_vm2, %v2444_v4 }
 0x61a   :  { %2452 = vsyncpa [#allocation4], 1 }

</bundles_post_ra>
